<compile_context>
chip_gen: v7x
topology: tpu7x:2x2x1
jax: 0.10.0
libtpu: 0.0.40
codegen_flags: <defaults>
</compile_context>

<pallas_src>
import functools

import jax
import jax.numpy as jnp
from jax.experimental import pallas as pl
from jax.experimental.pallas import tpu as pltpu


def encoder_kernel(x_ref,
                   wqkv_ref, bqkv_ref, wo_ref, bo_ref,
                   gamma_ref, beta_ref,
                   w1_ref, b1_ref, w2_ref, b2_ref,
                   out_ref, *, num_heads):
    B, S, E = x_ref.shape
    dh = E // num_heads
    BS = B * S

    # Activations kept in f32 for residual / layernorm numerics; cast to bf16 only
    # at MXU inputs (accumulation stays f32).
    x3 = x_ref[...].astype(jnp.float32)                 # (B, S, E)
    x2 = x3.reshape(BS, E)                              # merge leading dims (layout-friendly)

    # ---- hoisted small parameters (read & broadcast once) ----
    bqkv = bqkv_ref[...].astype(jnp.float32)            # (1, 3E)
    bo = bo_ref[...].astype(jnp.float32)                # (1, E)
    b1 = b1_ref[...].astype(jnp.float32)                # (1, H)
    b2 = b2_ref[...].astype(jnp.float32)                # (1, E)
    gamma = gamma_ref[...].astype(jnp.float32)          # (1, E)
    beta = beta_ref[...].astype(jnp.float32)            # (1, E)

    # ---- fused Q/K/V projection: one (BS, E) @ (E, 3E) matmul ----
    qkv = jnp.dot(x2.astype(jnp.bfloat16), wqkv_ref[...],
                  preferred_element_type=jnp.float32) + bqkv       # (BS, 3E)
    qkv3 = qkv.reshape(B, S, 3 * E)                                 # (B, S, 3E)

    # ---- multi-head self attention (batched over B; static head loop) ----
    scale = 1.0 / (dh ** 0.5)
    head_outs = []
    for h in range(num_heads):
        qh = qkv3[:, :, h * dh:(h + 1) * dh].astype(jnp.bfloat16)           # (B, S, dh)
        kh = qkv3[:, :, E + h * dh:E + (h + 1) * dh].astype(jnp.bfloat16)    # (B, S, dh)
        vh = qkv3[:, :, 2 * E + h * dh:2 * E + (h + 1) * dh].astype(jnp.bfloat16)
        s = jnp.einsum('bqd,bkd->bqk', qh, kh,
                       preferred_element_type=jnp.float32) * scale           # (B, S, S)
        s = s - jnp.max(s, axis=-1, keepdims=True)
        p = jnp.exp(s)
        p = p * pl.reciprocal(jnp.sum(p, axis=-1, keepdims=True), approx=True)
        head_outs.append(jnp.einsum('bqk,bkd->bqd', p.astype(jnp.bfloat16), vh,
                                    preferred_element_type=jnp.float32))     # (B, S, dh)
    attn = jnp.concatenate(head_outs, axis=-1).reshape(BS, E)                # (BS, E)

    # output projection
    values = jnp.dot(attn.astype(jnp.bfloat16), wo_ref[...],
                     preferred_element_type=jnp.float32) + bo                # (BS, E)

    # ---- shared LayerNorm (same gamma/beta used twice, as in the PyTorch module) ----
    def layer_norm(t):
        mean = jnp.mean(t, axis=-1, keepdims=True)
        cent = t - mean
        var = jnp.mean(cent * cent, axis=-1, keepdims=True)
        return cent * jax.lax.rsqrt(var + 1e-5) * gamma + beta

    # dropout(embeddings) / dropout(output) are identity in eval mode
    new_emb = layer_norm(x2 + values)                                        # (BS, E)

    # ---- position-wise feed forward: Linear -> ReLU -> (dropout) -> Linear ----
    h1 = jnp.maximum(jnp.dot(new_emb.astype(jnp.bfloat16), w1_ref[...],
                             preferred_element_type=jnp.float32) + b1, 0.0)   # (BS, H)
    ffn = jnp.dot(h1.astype(jnp.bfloat16), w2_ref[...],
                  preferred_element_type=jnp.float32) + b2                    # (BS, E)

    out = layer_norm(new_emb + ffn)
    out_ref[...] = out.reshape(B, S, E).astype(out_ref.dtype)


def encoder_forward(x, params, *, num_heads, grid_over_batch=False):
    """grid_over_batch=True keeps a 'parallel' batch grid axis (useful on v7x's 2 TCs);
    the default single grid point is best on v5e/v6e (single TensorCore)."""
    B, S, E = x.shape
    H = params["w1"].shape[1]

    # Fuse QKV weights/biases in the wrapper; cast matmul weights to bf16.
    wqkv = jnp.concatenate([params["wq"], params["wk"], params["wv"]],
                           axis=1).astype(jnp.bfloat16)                       # (E, 3E)
    bqkv = jnp.concatenate([params["bq"], params["bk"], params["bv"]],
                           axis=1).astype(jnp.float32)                        # (1, 3E)
    weights = [
        wqkv, bqkv,
        params["wo"].astype(jnp.bfloat16), params["bo"].astype(jnp.float32),
        params["gamma"].astype(jnp.float32), params["beta"].astype(jnp.float32),
        params["w1"].astype(jnp.bfloat16), params["b1"].astype(jnp.float32),
        params["w2"].astype(jnp.bfloat16), params["b2"].astype(jnp.float32),
    ]

    if grid_over_batch:
        grid = (B,)
        x_spec = pl.BlockSpec((1, S, E), lambda b: (b, 0, 0))
        out_spec = pl.BlockSpec((1, S, E), lambda b: (b, 0, 0))
    else:
        grid = (1,)
        x_spec = pl.BlockSpec((B, S, E), lambda b: (0, 0, 0))
        out_spec = pl.BlockSpec((B, S, E), lambda b: (0, 0, 0))

    def full_spec(arr):
        nd = arr.ndim
        return pl.BlockSpec(arr.shape, lambda b, _nd=nd: (0,) * _nd)

    in_specs = [x_spec] + [full_spec(w) for w in weights]

    # Advisory cost hint for the XLA scheduler.
    flops = B * (2 * S * E * (3 * E)        # fused QKV projection
                 + 4 * S * S * E            # QK^T and PV over all heads
                 + 2 * S * E * E            # output projection
                 + 4 * S * E * H)           # FFN (two matmuls)
    itemsize = jnp.dtype(x.dtype).itemsize
    bytes_accessed = int(2 * x.size * itemsize
                         + sum(int(w.size) * jnp.dtype(w.dtype).itemsize for w in weights))
    cost = pl.CostEstimate(flops=int(flops),
                           transcendentals=int(B * num_heads * S * S),
                           bytes_accessed=bytes_accessed)

    return pl.pallas_call(
        functools.partial(encoder_kernel, num_heads=num_heads),
        out_shape=jax.ShapeDtypeStruct((B, S, E), x.dtype),
        grid_spec=pltpu.PrefetchScalarGridSpec(
            num_scalar_prefetch=0,
            grid=grid,
            in_specs=in_specs,
            out_specs=out_spec,
        ),
        compiler_params=pltpu.CompilerParams(
            dimension_semantics=("parallel",),
            vmem_limit_bytes=64 * 1024 * 1024),
        cost_estimate=cost,
    )(x, *weights)


def init_params(key, embedding_dim, hidden_dim):
    ks = jax.random.split(key, 8)
    scale_e = 1.0 / (embedding_dim ** 0.5)
    scale_h = 1.0 / (hidden_dim ** 0.5)
    E, H = embedding_dim, hidden_dim
    return {
        "wq": jax.random.normal(ks[0], (E, E), jnp.float32) * scale_e,
        "bq": jnp.zeros((1, E), jnp.float32),
        "wk": jax.random.normal(ks[1], (E, E), jnp.float32) * scale_e,
        "bk": jnp.zeros((1, E), jnp.float32),
        "wv": jax.random.normal(ks[2], (E, E), jnp.float32) * scale_e,
        "bv": jnp.zeros((1, E), jnp.float32),
        "wo": jax.random.normal(ks[3], (E, E), jnp.float32) * scale_e,
        "bo": jnp.zeros((1, E), jnp.float32),
        "gamma": jnp.ones((1, E), jnp.float32),
        "beta": jnp.zeros((1, E), jnp.float32),
        "w1": jax.random.normal(ks[4], (E, H), jnp.float32) * scale_e,
        "b1": jnp.zeros((1, H), jnp.float32),
        "w2": jax.random.normal(ks[5], (H, E), jnp.float32) * scale_h,
        "b2": jnp.zeros((1, E), jnp.float32),
    }


if __name__ == "__main__":
    # batch=2, seq=8, embedding_dim=32, hidden_dim=64, num_heads=4
    # (vocab_length / max_sequence_length unused in forward).
    B, S, E, H, NH = 2, 8, 32, 64, 4
    key = jax.random.PRNGKey(0)
    k_x, k_p = jax.random.split(key)
    x = jax.random.normal(k_x, (B, S, E), jnp.float32)
    params = init_params(k_p, E, H)

    out = encoder_forward(x, params, num_heads=NH)
    out = jax.block_until_ready(out)
    assert out.shape == (B, S, E)
    assert jnp.all(jnp.isfinite(out))
    # TODO(synk): train-mode nn.Dropout (RNG masking) not implemented; eval-mode identity.
    print("KERNEL_OK")
</pallas_src>

<mosaic_0001>
module attributes {stable_mosaic.version = 11 : i64} {
  func.func @encoder_kernel(%arg0: i32, %arg1: memref<2x8x32xf32, #tpu.memory_space<vmem>>, %arg2: memref<32x96xbf16, #tpu.memory_space<vmem>>, %arg3: memref<1x96xf32, #tpu.memory_space<vmem>>, %arg4: memref<32x32xbf16, #tpu.memory_space<vmem>>, %arg5: memref<1x32xf32, #tpu.memory_space<vmem>>, %arg6: memref<1x32xf32, #tpu.memory_space<vmem>>, %arg7: memref<1x32xf32, #tpu.memory_space<vmem>>, %arg8: memref<32x64xbf16, #tpu.memory_space<vmem>>, %arg9: memref<1x64xf32, #tpu.memory_space<vmem>>, %arg10: memref<64x32xbf16, #tpu.memory_space<vmem>>, %arg11: memref<1x32xf32, #tpu.memory_space<vmem>>, %arg12: memref<2x8x32xf32, #tpu.memory_space<vmem>>) attributes {dimension_semantics = [#tpu.dimension_semantics<parallel>], iteration_bounds = array<i64: 1>, scalar_prefetch = 0 : i64, scratch_operands = 0 : i64, tpu.core_type = #tpu.core_type<tc>, window_params = [{pipeline_mode = #tpu.pipeline_mode<synchronous>, transform_indices = @transform_0, window_bounds = array<i64: 2, 8, 32>}, {pipeline_mode = #tpu.pipeline_mode<synchronous>, transform_indices = @transform_1, window_bounds = array<i64: 32, 96>}, {pipeline_mode = #tpu.pipeline_mode<synchronous>, transform_indices = @transform_2, window_bounds = array<i64: 1, 96>}, {pipeline_mode = #tpu.pipeline_mode<synchronous>, transform_indices = @transform_3, window_bounds = array<i64: 32, 32>}, {pipeline_mode = #tpu.pipeline_mode<synchronous>, transform_indices = @transform_4, window_bounds = array<i64: 1, 32>}, {pipeline_mode = #tpu.pipeline_mode<synchronous>, transform_indices = @transform_5, window_bounds = array<i64: 1, 32>}, {pipeline_mode = #tpu.pipeline_mode<synchronous>, transform_indices = @transform_6, window_bounds = array<i64: 1, 32>}, {pipeline_mode = #tpu.pipeline_mode<synchronous>, transform_indices = @transform_7, window_bounds = array<i64: 32, 64>}, {pipeline_mode = #tpu.pipeline_mode<synchronous>, transform_indices = @transform_8, window_bounds = array<i64: 1, 64>}, {pipeline_mode = #tpu.pipeline_mode<synchronous>, transform_indices = @transform_9, window_bounds = array<i64: 64, 32>}, {pipeline_mode = #tpu.pipeline_mode<synchronous>, transform_indices = @transform_10, window_bounds = array<i64: 1, 32>}, {pipeline_mode = #tpu.pipeline_mode<synchronous>, transform_indices = @transform_11, window_bounds = array<i64: 2, 8, 32>}]} {
    %c0 = arith.constant 0 : index
    %c0_0 = arith.constant 0 : index
    %c0_1 = arith.constant 0 : index
    %0 = vector.load %arg1[%c0, %c0_0, %c0_1] : memref<2x8x32xf32, #tpu.memory_space<vmem>>, vector<2x8x32xf32>
    %1 = vector.shape_cast %0 : vector<2x8x32xf32> to vector<16x32xf32>
    %c0_2 = arith.constant 0 : index
    %c0_3 = arith.constant 0 : index
    %2 = vector.load %arg3[%c0_2, %c0_3] : memref<1x96xf32, #tpu.memory_space<vmem>>, vector<1x96xf32>
    %c0_4 = arith.constant 0 : index
    %c0_5 = arith.constant 0 : index
    %3 = vector.load %arg5[%c0_4, %c0_5] : memref<1x32xf32, #tpu.memory_space<vmem>>, vector<1x32xf32>
    %c0_6 = arith.constant 0 : index
    %c0_7 = arith.constant 0 : index
    %4 = vector.load %arg9[%c0_6, %c0_7] : memref<1x64xf32, #tpu.memory_space<vmem>>, vector<1x64xf32>
    %c0_8 = arith.constant 0 : index
    %c0_9 = arith.constant 0 : index
    %5 = vector.load %arg11[%c0_8, %c0_9] : memref<1x32xf32, #tpu.memory_space<vmem>>, vector<1x32xf32>
    %c0_10 = arith.constant 0 : index
    %c0_11 = arith.constant 0 : index
    %6 = vector.load %arg6[%c0_10, %c0_11] : memref<1x32xf32, #tpu.memory_space<vmem>>, vector<1x32xf32>
    %c0_12 = arith.constant 0 : index
    %c0_13 = arith.constant 0 : index
    %7 = vector.load %arg7[%c0_12, %c0_13] : memref<1x32xf32, #tpu.memory_space<vmem>>, vector<1x32xf32>
    %8 = arith.truncf %1 : vector<16x32xf32> to vector<16x32xbf16>
    %c0_14 = arith.constant 0 : index
    %c0_15 = arith.constant 0 : index
    %9 = vector.load %arg2[%c0_14, %c0_15] : memref<32x96xbf16, #tpu.memory_space<vmem>>, vector<32x96xbf16>
    %cst = arith.constant dense<0.000000e+00> : vector<16x96xf32>
    %10 = tpu.matmul %8, %9, %cst {dimension_numbers = #tpu.dot_dimension_numbers<[1], [0], [0], [1], [0, 0, 1, 1], [], []>} : vector<16x32xbf16>, vector<32x96xbf16>, vector<16x96xf32> -> vector<16x96xf32>
    %11 = vector.broadcast %2 : vector<1x96xf32> to vector<16x96xf32>
    %12 = arith.addf %10, %11 : vector<16x96xf32>
    %13 = vector.shape_cast %12 : vector<16x96xf32> to vector<2x8x96xf32>
    %14 = vector.extract_strided_slice %13 {offsets = [0, 0, 0], sizes = [2, 8, 8], strides = [1, 1, 1]} : vector<2x8x96xf32> to vector<2x8x8xf32>
    %15 = arith.truncf %14 : vector<2x8x8xf32> to vector<2x8x8xbf16>
    %16 = vector.extract_strided_slice %13 {offsets = [0, 0, 32], sizes = [2, 8, 8], strides = [1, 1, 1]} : vector<2x8x96xf32> to vector<2x8x8xf32>
    %17 = arith.truncf %16 : vector<2x8x8xf32> to vector<2x8x8xbf16>
    %18 = vector.extract_strided_slice %13 {offsets = [0, 0, 64], sizes = [2, 8, 8], strides = [1, 1, 1]} : vector<2x8x96xf32> to vector<2x8x8xf32>
    %19 = arith.truncf %18 : vector<2x8x8xf32> to vector<2x8x8xbf16>
    "tpu.trace_start"() <{level = 10 : i32, message = "bqd,bkd->bqk"}> : () -> ()
    %cst_16 = arith.constant dense<0.000000e+00> : vector<2x8x8xf32>
    %20 = tpu.matmul %15, %17, %cst_16 {dimension_numbers = #tpu.dot_dimension_numbers<[2], [2], [1], [1], [0, 0, 0, 1, 1, 1], [0], [0]>} : vector<2x8x8xbf16>, vector<2x8x8xbf16>, vector<2x8x8xf32> -> vector<2x8x8xf32>
    "tpu.trace_stop"() : () -> ()
    %cst_17 = arith.constant 0.353553385 : f32
    %21 = vector.broadcast %cst_17 : f32 to vector<2x8x8xf32>
    %22 = arith.mulf %20, %21 : vector<2x8x8xf32>
    %cst_18 = arith.constant dense<0xFF800000> : vector<2x8xf32>
    %23 = vector.multi_reduction <maximumf>, %22, %cst_18 [2] : vector<2x8x8xf32> to vector<2x8xf32>
    %24 = vector.shape_cast %23 : vector<2x8xf32> to vector<2x8x1xf32>
    %25 = vector.broadcast %24 : vector<2x8x1xf32> to vector<2x8x8xf32>
    %26 = arith.subf %22, %25 : vector<2x8x8xf32>
    %27 = math.exp %26 : vector<2x8x8xf32>
    %cst_19 = arith.constant dense<0.000000e+00> : vector<2x8xf32>
    %28 = vector.multi_reduction <add>, %27, %cst_19 [2] : vector<2x8x8xf32> to vector<2x8xf32>
    %29 = vector.shape_cast %28 : vector<2x8xf32> to vector<2x8x1xf32>
    %30 = tpu.reciprocal %29 {approx = true} : vector<2x8x1xf32> -> vector<2x8x1xf32>
    %31 = vector.broadcast %30 : vector<2x8x1xf32> to vector<2x8x8xf32>
    %32 = arith.mulf %27, %31 : vector<2x8x8xf32>
    %33 = arith.truncf %32 : vector<2x8x8xf32> to vector<2x8x8xbf16>
    "tpu.trace_start"() <{level = 10 : i32, message = "bqk,bkd->bqd"}> : () -> ()
    %cst_20 = arith.constant dense<0.000000e+00> : vector<2x8x8xf32>
    %34 = tpu.matmul %33, %19, %cst_20 {dimension_numbers = #tpu.dot_dimension_numbers<[2], [1], [1], [2], [0, 0, 0, 1, 1, 2], [0], [0]>} : vector<2x8x8xbf16>, vector<2x8x8xbf16>, vector<2x8x8xf32> -> vector<2x8x8xf32>
    "tpu.trace_stop"() : () -> ()
    %35 = vector.extract_strided_slice %13 {offsets = [0, 0, 8], sizes = [2, 8, 8], strides = [1, 1, 1]} : vector<2x8x96xf32> to vector<2x8x8xf32>
    %36 = arith.truncf %35 : vector<2x8x8xf32> to vector<2x8x8xbf16>
    %37 = vector.extract_strided_slice %13 {offsets = [0, 0, 40], sizes = [2, 8, 8], strides = [1, 1, 1]} : vector<2x8x96xf32> to vector<2x8x8xf32>
    %38 = arith.truncf %37 : vector<2x8x8xf32> to vector<2x8x8xbf16>
    %39 = vector.extract_strided_slice %13 {offsets = [0, 0, 72], sizes = [2, 8, 8], strides = [1, 1, 1]} : vector<2x8x96xf32> to vector<2x8x8xf32>
    %40 = arith.truncf %39 : vector<2x8x8xf32> to vector<2x8x8xbf16>
    "tpu.trace_start"() <{level = 10 : i32, message = "bqd,bkd->bqk"}> : () -> ()
    %cst_21 = arith.constant dense<0.000000e+00> : vector<2x8x8xf32>
    %41 = tpu.matmul %36, %38, %cst_21 {dimension_numbers = #tpu.dot_dimension_numbers<[2], [2], [1], [1], [0, 0, 0, 1, 1, 1], [0], [0]>} : vector<2x8x8xbf16>, vector<2x8x8xbf16>, vector<2x8x8xf32> -> vector<2x8x8xf32>
    "tpu.trace_stop"() : () -> ()
    %cst_22 = arith.constant 0.353553385 : f32
    %42 = vector.broadcast %cst_22 : f32 to vector<2x8x8xf32>
    %43 = arith.mulf %41, %42 : vector<2x8x8xf32>
    %cst_23 = arith.constant dense<0xFF800000> : vector<2x8xf32>
    %44 = vector.multi_reduction <maximumf>, %43, %cst_23 [2] : vector<2x8x8xf32> to vector<2x8xf32>
    %45 = vector.shape_cast %44 : vector<2x8xf32> to vector<2x8x1xf32>
    %46 = vector.broadcast %45 : vector<2x8x1xf32> to vector<2x8x8xf32>
    %47 = arith.subf %43, %46 : vector<2x8x8xf32>
    %48 = math.exp %47 : vector<2x8x8xf32>
    %cst_24 = arith.constant dense<0.000000e+00> : vector<2x8xf32>
    %49 = vector.multi_reduction <add>, %48, %cst_24 [2] : vector<2x8x8xf32> to vector<2x8xf32>
    %50 = vector.shape_cast %49 : vector<2x8xf32> to vector<2x8x1xf32>
    %51 = tpu.reciprocal %50 {approx = true} : vector<2x8x1xf32> -> vector<2x8x1xf32>
    %52 = vector.broadcast %51 : vector<2x8x1xf32> to vector<2x8x8xf32>
    %53 = arith.mulf %48, %52 : vector<2x8x8xf32>
    %54 = arith.truncf %53 : vector<2x8x8xf32> to vector<2x8x8xbf16>
    "tpu.trace_start"() <{level = 10 : i32, message = "bqk,bkd->bqd"}> : () -> ()
    %cst_25 = arith.constant dense<0.000000e+00> : vector<2x8x8xf32>
    %55 = tpu.matmul %54, %40, %cst_25 {dimension_numbers = #tpu.dot_dimension_numbers<[2], [1], [1], [2], [0, 0, 0, 1, 1, 2], [0], [0]>} : vector<2x8x8xbf16>, vector<2x8x8xbf16>, vector<2x8x8xf32> -> vector<2x8x8xf32>
    "tpu.trace_stop"() : () -> ()
    %56 = vector.extract_strided_slice %13 {offsets = [0, 0, 16], sizes = [2, 8, 8], strides = [1, 1, 1]} : vector<2x8x96xf32> to vector<2x8x8xf32>
    %57 = arith.truncf %56 : vector<2x8x8xf32> to vector<2x8x8xbf16>
    %58 = vector.extract_strided_slice %13 {offsets = [0, 0, 48], sizes = [2, 8, 8], strides = [1, 1, 1]} : vector<2x8x96xf32> to vector<2x8x8xf32>
    %59 = arith.truncf %58 : vector<2x8x8xf32> to vector<2x8x8xbf16>
    %60 = vector.extract_strided_slice %13 {offsets = [0, 0, 80], sizes = [2, 8, 8], strides = [1, 1, 1]} : vector<2x8x96xf32> to vector<2x8x8xf32>
    %61 = arith.truncf %60 : vector<2x8x8xf32> to vector<2x8x8xbf16>
    "tpu.trace_start"() <{level = 10 : i32, message = "bqd,bkd->bqk"}> : () -> ()
    %cst_26 = arith.constant dense<0.000000e+00> : vector<2x8x8xf32>
    %62 = tpu.matmul %57, %59, %cst_26 {dimension_numbers = #tpu.dot_dimension_numbers<[2], [2], [1], [1], [0, 0, 0, 1, 1, 1], [0], [0]>} : vector<2x8x8xbf16>, vector<2x8x8xbf16>, vector<2x8x8xf32> -> vector<2x8x8xf32>
    "tpu.trace_stop"() : () -> ()
    %cst_27 = arith.constant 0.353553385 : f32
    %63 = vector.broadcast %cst_27 : f32 to vector<2x8x8xf32>
    %64 = arith.mulf %62, %63 : vector<2x8x8xf32>
    %cst_28 = arith.constant dense<0xFF800000> : vector<2x8xf32>
    %65 = vector.multi_reduction <maximumf>, %64, %cst_28 [2] : vector<2x8x8xf32> to vector<2x8xf32>
    %66 = vector.shape_cast %65 : vector<2x8xf32> to vector<2x8x1xf32>
    %67 = vector.broadcast %66 : vector<2x8x1xf32> to vector<2x8x8xf32>
    %68 = arith.subf %64, %67 : vector<2x8x8xf32>
    %69 = math.exp %68 : vector<2x8x8xf32>
    %cst_29 = arith.constant dense<0.000000e+00> : vector<2x8xf32>
    %70 = vector.multi_reduction <add>, %69, %cst_29 [2] : vector<2x8x8xf32> to vector<2x8xf32>
    %71 = vector.shape_cast %70 : vector<2x8xf32> to vector<2x8x1xf32>
    %72 = tpu.reciprocal %71 {approx = true} : vector<2x8x1xf32> -> vector<2x8x1xf32>
    %73 = vector.broadcast %72 : vector<2x8x1xf32> to vector<2x8x8xf32>
    %74 = arith.mulf %69, %73 : vector<2x8x8xf32>
    %75 = arith.truncf %74 : vector<2x8x8xf32> to vector<2x8x8xbf16>
    "tpu.trace_start"() <{level = 10 : i32, message = "bqk,bkd->bqd"}> : () -> ()
    %cst_30 = arith.constant dense<0.000000e+00> : vector<2x8x8xf32>
    %76 = tpu.matmul %75, %61, %cst_30 {dimension_numbers = #tpu.dot_dimension_numbers<[2], [1], [1], [2], [0, 0, 0, 1, 1, 2], [0], [0]>} : vector<2x8x8xbf16>, vector<2x8x8xbf16>, vector<2x8x8xf32> -> vector<2x8x8xf32>
    "tpu.trace_stop"() : () -> ()
    %77 = vector.extract_strided_slice %13 {offsets = [0, 0, 24], sizes = [2, 8, 8], strides = [1, 1, 1]} : vector<2x8x96xf32> to vector<2x8x8xf32>
    %78 = arith.truncf %77 : vector<2x8x8xf32> to vector<2x8x8xbf16>
    %79 = vector.extract_strided_slice %13 {offsets = [0, 0, 56], sizes = [2, 8, 8], strides = [1, 1, 1]} : vector<2x8x96xf32> to vector<2x8x8xf32>
    %80 = arith.truncf %79 : vector<2x8x8xf32> to vector<2x8x8xbf16>
    %81 = vector.extract_strided_slice %13 {offsets = [0, 0, 88], sizes = [2, 8, 8], strides = [1, 1, 1]} : vector<2x8x96xf32> to vector<2x8x8xf32>
    %82 = arith.truncf %81 : vector<2x8x8xf32> to vector<2x8x8xbf16>
    "tpu.trace_start"() <{level = 10 : i32, message = "bqd,bkd->bqk"}> : () -> ()
    %cst_31 = arith.constant dense<0.000000e+00> : vector<2x8x8xf32>
    %83 = tpu.matmul %78, %80, %cst_31 {dimension_numbers = #tpu.dot_dimension_numbers<[2], [2], [1], [1], [0, 0, 0, 1, 1, 1], [0], [0]>} : vector<2x8x8xbf16>, vector<2x8x8xbf16>, vector<2x8x8xf32> -> vector<2x8x8xf32>
    "tpu.trace_stop"() : () -> ()
    %cst_32 = arith.constant 0.353553385 : f32
    %84 = vector.broadcast %cst_32 : f32 to vector<2x8x8xf32>
    %85 = arith.mulf %83, %84 : vector<2x8x8xf32>
    %cst_33 = arith.constant dense<0xFF800000> : vector<2x8xf32>
    %86 = vector.multi_reduction <maximumf>, %85, %cst_33 [2] : vector<2x8x8xf32> to vector<2x8xf32>
    %87 = vector.shape_cast %86 : vector<2x8xf32> to vector<2x8x1xf32>
    %88 = vector.broadcast %87 : vector<2x8x1xf32> to vector<2x8x8xf32>
    %89 = arith.subf %85, %88 : vector<2x8x8xf32>
    %90 = math.exp %89 : vector<2x8x8xf32>
    %cst_34 = arith.constant dense<0.000000e+00> : vector<2x8xf32>
    %91 = vector.multi_reduction <add>, %90, %cst_34 [2] : vector<2x8x8xf32> to vector<2x8xf32>
    %92 = vector.shape_cast %91 : vector<2x8xf32> to vector<2x8x1xf32>
    %93 = tpu.reciprocal %92 {approx = true} : vector<2x8x1xf32> -> vector<2x8x1xf32>
    %94 = vector.broadcast %93 : vector<2x8x1xf32> to vector<2x8x8xf32>
    %95 = arith.mulf %90, %94 : vector<2x8x8xf32>
    %96 = arith.truncf %95 : vector<2x8x8xf32> to vector<2x8x8xbf16>
    "tpu.trace_start"() <{level = 10 : i32, message = "bqk,bkd->bqd"}> : () -> ()
    %cst_35 = arith.constant dense<0.000000e+00> : vector<2x8x8xf32>
    %97 = tpu.matmul %96, %82, %cst_35 {dimension_numbers = #tpu.dot_dimension_numbers<[2], [1], [1], [2], [0, 0, 0, 1, 1, 2], [0], [0]>} : vector<2x8x8xbf16>, vector<2x8x8xbf16>, vector<2x8x8xf32> -> vector<2x8x8xf32>
    "tpu.trace_stop"() : () -> ()
    %98 = tpu.concatenate %34, %55, %76, %97 in 2 : vector<2x8x8xf32>, vector<2x8x8xf32>, vector<2x8x8xf32>, vector<2x8x8xf32> -> vector<2x8x32xf32>
    %99 = vector.shape_cast %98 : vector<2x8x32xf32> to vector<16x32xf32>
    %100 = arith.truncf %99 : vector<16x32xf32> to vector<16x32xbf16>
    %c0_36 = arith.constant 0 : index
    %c0_37 = arith.constant 0 : index
    %101 = vector.load %arg4[%c0_36, %c0_37] : memref<32x32xbf16, #tpu.memory_space<vmem>>, vector<32x32xbf16>
    %cst_38 = arith.constant dense<0.000000e+00> : vector<16x32xf32>
    %102 = tpu.matmul %100, %101, %cst_38 {dimension_numbers = #tpu.dot_dimension_numbers<[1], [0], [0], [1], [0, 0, 1, 1], [], []>} : vector<16x32xbf16>, vector<32x32xbf16>, vector<16x32xf32> -> vector<16x32xf32>
    %103 = vector.broadcast %3 : vector<1x32xf32> to vector<16x32xf32>
    %104 = arith.addf %102, %103 : vector<16x32xf32>
    %105 = arith.addf %1, %104 : vector<16x32xf32>
    %cst_39 = arith.constant dense<0.000000e+00> : vector<16xf32>
    %106 = vector.multi_reduction <add>, %105, %cst_39 [1] : vector<16x32xf32> to vector<16xf32>
    %107 = vector.shape_cast %106 : vector<16xf32> to vector<16x1xf32>
    %cst_40 = arith.constant 3.200000e+01 : f32
    %108 = vector.broadcast %cst_40 : f32 to vector<16x1xf32>
    %109 = arith.divf %107, %108 : vector<16x1xf32>
    %110 = vector.broadcast %109 : vector<16x1xf32> to vector<16x32xf32>
    %111 = arith.subf %105, %110 : vector<16x32xf32>
    %112 = arith.mulf %111, %111 : vector<16x32xf32>
    %cst_41 = arith.constant dense<0.000000e+00> : vector<16xf32>
    %113 = vector.multi_reduction <add>, %112, %cst_41 [1] : vector<16x32xf32> to vector<16xf32>
    %114 = vector.shape_cast %113 : vector<16xf32> to vector<16x1xf32>
    %cst_42 = arith.constant 3.200000e+01 : f32
    %115 = vector.broadcast %cst_42 : f32 to vector<16x1xf32>
    %116 = arith.divf %114, %115 : vector<16x1xf32>
    %cst_43 = arith.constant 9.99999974E-6 : f32
    %117 = vector.broadcast %cst_43 : f32 to vector<16x1xf32>
    %118 = arith.addf %116, %117 : vector<16x1xf32>
    %119 = math.rsqrt %118 : vector<16x1xf32>
    %120 = vector.broadcast %119 : vector<16x1xf32> to vector<16x32xf32>
    %121 = arith.mulf %111, %120 : vector<16x32xf32>
    %122 = vector.broadcast %6 : vector<1x32xf32> to vector<16x32xf32>
    %123 = arith.mulf %121, %122 : vector<16x32xf32>
    %124 = vector.broadcast %7 : vector<1x32xf32> to vector<16x32xf32>
    %125 = arith.addf %123, %124 : vector<16x32xf32>
    %126 = arith.truncf %125 : vector<16x32xf32> to vector<16x32xbf16>
    %c0_44 = arith.constant 0 : index
    %c0_45 = arith.constant 0 : index
    %127 = vector.load %arg8[%c0_44, %c0_45] : memref<32x64xbf16, #tpu.memory_space<vmem>>, vector<32x64xbf16>
    %cst_46 = arith.constant dense<0.000000e+00> : vector<16x64xf32>
    %128 = tpu.matmul %126, %127, %cst_46 {dimension_numbers = #tpu.dot_dimension_numbers<[1], [0], [0], [1], [0, 0, 1, 1], [], []>} : vector<16x32xbf16>, vector<32x64xbf16>, vector<16x64xf32> -> vector<16x64xf32>
    %129 = vector.broadcast %4 : vector<1x64xf32> to vector<16x64xf32>
    %130 = arith.addf %128, %129 : vector<16x64xf32>
    %cst_47 = arith.constant 0.000000e+00 : f32
    %131 = vector.broadcast %cst_47 : f32 to vector<16x64xf32>
    %132 = arith.maximumf %130, %131 : vector<16x64xf32>
    %133 = arith.truncf %132 : vector<16x64xf32> to vector<16x64xbf16>
    %c0_48 = arith.constant 0 : index
    %c0_49 = arith.constant 0 : index
    %134 = vector.load %arg10[%c0_48, %c0_49] : memref<64x32xbf16, #tpu.memory_space<vmem>>, vector<64x32xbf16>
    %cst_50 = arith.constant dense<0.000000e+00> : vector<16x32xf32>
    %135 = tpu.matmul %133, %134, %cst_50 {dimension_numbers = #tpu.dot_dimension_numbers<[1], [0], [0], [1], [0, 0, 1, 1], [], []>} : vector<16x64xbf16>, vector<64x32xbf16>, vector<16x32xf32> -> vector<16x32xf32>
    %136 = vector.broadcast %5 : vector<1x32xf32> to vector<16x32xf32>
    %137 = arith.addf %135, %136 : vector<16x32xf32>
    %138 = arith.addf %125, %137 : vector<16x32xf32>
    %cst_51 = arith.constant dense<0.000000e+00> : vector<16xf32>
    %139 = vector.multi_reduction <add>, %138, %cst_51 [1] : vector<16x32xf32> to vector<16xf32>
    %140 = vector.shape_cast %139 : vector<16xf32> to vector<16x1xf32>
    %cst_52 = arith.constant 3.200000e+01 : f32
    %141 = vector.broadcast %cst_52 : f32 to vector<16x1xf32>
    %142 = arith.divf %140, %141 : vector<16x1xf32>
    %143 = vector.broadcast %142 : vector<16x1xf32> to vector<16x32xf32>
    %144 = arith.subf %138, %143 : vector<16x32xf32>
    %145 = arith.mulf %144, %144 : vector<16x32xf32>
    %cst_53 = arith.constant dense<0.000000e+00> : vector<16xf32>
    %146 = vector.multi_reduction <add>, %145, %cst_53 [1] : vector<16x32xf32> to vector<16xf32>
    %147 = vector.shape_cast %146 : vector<16xf32> to vector<16x1xf32>
    %cst_54 = arith.constant 3.200000e+01 : f32
    %148 = vector.broadcast %cst_54 : f32 to vector<16x1xf32>
    %149 = arith.divf %147, %148 : vector<16x1xf32>
    %cst_55 = arith.constant 9.99999974E-6 : f32
    %150 = vector.broadcast %cst_55 : f32 to vector<16x1xf32>
    %151 = arith.addf %149, %150 : vector<16x1xf32>
    %152 = math.rsqrt %151 : vector<16x1xf32>
    %153 = vector.broadcast %152 : vector<16x1xf32> to vector<16x32xf32>
    %154 = arith.mulf %144, %153 : vector<16x32xf32>
    %155 = vector.broadcast %6 : vector<1x32xf32> to vector<16x32xf32>
    %156 = arith.mulf %154, %155 : vector<16x32xf32>
    %157 = vector.broadcast %7 : vector<1x32xf32> to vector<16x32xf32>
    %158 = arith.addf %156, %157 : vector<16x32xf32>
    %159 = vector.shape_cast %158 : vector<16x32xf32> to vector<2x8x32xf32>
    %c0_56 = arith.constant 0 : index
    %c0_57 = arith.constant 0 : index
    %c0_58 = arith.constant 0 : index
    %160 = vector.load %arg12[%c0_56, %c0_57, %c0_58] : memref<2x8x32xf32, #tpu.memory_space<vmem>>, vector<2x8x32xf32>
    tpu.vector_store %arg12[%c0_56, %c0_57, %c0_58], %159 {strides = array<i32>} : memref<2x8x32xf32, #tpu.memory_space<vmem>>, vector<2x8x32xf32>,
    return
  }
  func.func @transform_0(%arg0: i32) -> (i32, i32, i32) {
    %c0_i32 = arith.constant 0 : i32
    %c0_i32_0 = arith.constant 0 : i32
    %c0_i32_1 = arith.constant 0 : i32
    %c0_i32_2 = arith.constant 0 : i32
    return %c0_i32, %c0_i32_0, %c0_i32_1 : i32, i32, i32
  }
  func.func @transform_1(%arg0: i32) -> (i32, i32) {
    %c0_i32 = arith.constant 0 : i32
    %c0_i32_0 = arith.constant 0 : i32
    %c0_i32_1 = arith.constant 0 : i32
    return %c0_i32, %c0_i32_0 : i32, i32
  }
  func.func @transform_2(%arg0: i32) -> (i32, i32) {
    %c0_i32 = arith.constant 0 : i32
    %c0_i32_0 = arith.constant 0 : i32
    %c0_i32_1 = arith.constant 0 : i32
    return %c0_i32, %c0_i32_0 : i32, i32
  }
  func.func @transform_3(%arg0: i32) -> (i32, i32) {
    %c0_i32 = arith.constant 0 : i32
    %c0_i32_0 = arith.constant 0 : i32
    %c0_i32_1 = arith.constant 0 : i32
    return %c0_i32, %c0_i32_0 : i32, i32
  }
  func.func @transform_4(%arg0: i32) -> (i32, i32) {
    %c0_i32 = arith.constant 0 : i32
    %c0_i32_0 = arith.constant 0 : i32
    %c0_i32_1 = arith.constant 0 : i32
    return %c0_i32, %c0_i32_0 : i32, i32
  }
  func.func @transform_5(%arg0: i32) -> (i32, i32) {
    %c0_i32 = arith.constant 0 : i32
    %c0_i32_0 = arith.constant 0 : i32
    %c0_i32_1 = arith.constant 0 : i32
    return %c0_i32, %c0_i32_0 : i32, i32
  }
  func.func @transform_6(%arg0: i32) -> (i32, i32) {
    %c0_i32 = arith.constant 0 : i32
    %c0_i32_0 = arith.constant 0 : i32
    %c0_i32_1 = arith.constant 0 : i32
    return %c0_i32, %c0_i32_0 : i32, i32
  }
  func.func @transform_7(%arg0: i32) -> (i32, i32) {
    %c0_i32 = arith.constant 0 : i32
    %c0_i32_0 = arith.constant 0 : i32
    %c0_i32_1 = arith.constant 0 : i32
    return %c0_i32, %c0_i32_0 : i32, i32
  }
  func.func @transform_8(%arg0: i32) -> (i32, i32) {
    %c0_i32 = arith.constant 0 : i32
    %c0_i32_0 = arith.constant 0 : i32
    %c0_i32_1 = arith.constant 0 : i32
    return %c0_i32, %c0_i32_0 : i32, i32
  }
  func.func @transform_9(%arg0: i32) -> (i32, i32) {
    %c0_i32 = arith.constant 0 : i32
    %c0_i32_0 = arith.constant 0 : i32
    %c0_i32_1 = arith.constant 0 : i32
    return %c0_i32, %c0_i32_0 : i32, i32
  }
  func.func @transform_10(%arg0: i32) -> (i32, i32) {
    %c0_i32 = arith.constant 0 : i32
    %c0_i32_0 = arith.constant 0 : i32
    %c0_i32_1 = arith.constant 0 : i32
    return %c0_i32, %c0_i32_0 : i32, i32
  }
  func.func @transform_11(%arg0: i32) -> (i32, i32, i32) {
    %c0_i32 = arith.constant 0 : i32
    %c0_i32_0 = arith.constant 0 : i32
    %c0_i32_1 = arith.constant 0 : i32
    %c0_i32_2 = arith.constant 0 : i32
    return %c0_i32, %c0_i32_0, %c0_i32_1 : i32, i32, i32
  }
}

</mosaic_0001>

<bundles_post_ra>
// kernel: tpu_custom_call.1
= control target key start
LH: loop header
LB: loop body
LE: loop exit
PB: predicated region body
PF: predicated region fallthrough
CT: control target
= control target key end

     0   :  { %16 = vsyncpa [#allocation3], 0  ;;  %s2530_s0 = inlined_call_operand.hbm [shape: f32[2,8,32], index: 0, kind: input, shape index: {}]   ;;  %s2531_s1 = inlined_call_operand.hbm [shape: bf16[32,96], index: 1, kind: input, shape index: {}]   ;;  %s2532_s2 = inlined_call_operand.hbm [shape: f32[1,96], index: 2, kind: input, shape index: {}]   ;;  %s2533_s3 = inlined_call_operand.hbm [shape: bf16[32,32], index: 3, kind: input, shape index: {}]   ;;  %s2534_s4 = inlined_call_operand.hbm [shape: f32[1,32], index: 4, kind: input, shape index: {}]   ;;  %s2535_s5 = inlined_call_operand.hbm [shape: f32[1,32], index: 5, kind: input, shape index: {}]   ;;  %s2536_s6 = inlined_call_operand.hbm [shape: f32[1,32], index: 6, kind: input, shape index: {}]   ;;  %s2537_s7 = inlined_call_operand.hbm [shape: bf16[32,64], index: 7, kind: input, shape index: {}]   ;;  %s2538_s8 = inlined_call_operand.hbm [shape: f32[1,64], index: 8, kind: input, shape index: {}]   ;;  %s2539_s9 = inlined_call_operand.hbm [shape: bf16[64,32], index: 9, kind: input, shape index: {}]   ;;  %s2540_s10 = inlined_call_operand.hbm [shape: f32[1,32], index: 10, kind: input, shape index: {}]   ;;  %s2541_s11 = inlined_call_operand.hbm [shape: f32[2,8,32], index: 11, kind: output, shape index: {}]  }
   0x1   :  { %17 = vsyncpa [#allocation6], 0 }
   0x2   :  { %18 = vsyncpa [#allocation9], 0 }
   0x3   :  { %19 = vsyncpa [#allocation12], 0 }
   0x4   :  { %20 = vsyncpa [#allocation15], 0 }
   0x5   :  { %21 = vsyncpa [#allocation18], 0 }
   0x6   :  { %22 = vsyncpa [#allocation4], 0  ;;  %s2083_s17 = smov [#allocation5]   ;;  %s1805_s21 = scalar_lea.hbm %s2531_s1, 256 }
   0x7   :  { %s40_s18 = sshll.u32 %s2083_s17, 4  ;;  %p1806_p0 = scmp.ne.s32.totalorder %s2531_s1, %s1805_s21  ;;  %s41_s18 = int_to_ptr.vmem [resolvable:$true] %s40_s18 }
   0x8   :  { %p1809_p1 = scmp.lt.u32.totalorder %s1805_s21, %s2531_s1 }
   0xa   :  { %p1811_p2 = pnand %p1809_p1, %p1806_p0 }
   0xc   :  { %1814 = shalt.err (!%p1811_p2)
}
   0xd   :  { %s1815_s26 = scalar_lea.vmem %s41_s18, 256  ;;  %p1820_p4 = scmp.lt.s32.totalorder %s41_s18, %s41_s18 }
   0xe   :  { %p1816_p3 = scmp.ne.s32.totalorder %s41_s18, %s1815_s26  ;;  %p1821_p5 = scmp.lt.s32.totalorder %s1815_s26, %s1815_s26 }
  0x10   :  { %p1822_p6 = por %p1821_p5, %p1820_p4 }
  0x12   :  { %p1823_p7 = pnand %p1822_p6, %p1816_p3 }
  0x14   :  { %1826 = shalt.err (!%p1823_p7)
}
  0x15   :  { %s2084_s27 = smov 64   ;;  %s2085_s28 = smov 4  }
  0x16   :  { %46 = dma.hbm_to_vmem [thread:$0]  %s2531_s1, 256, %s41_s18, [#allocation6], %s2084_s27, %s2084_s27, %s2085_s28  }
  0x17   :  { %s2086_s12 = smov [#allocation8]   ;;  %s2087_s14 = smov [#allocation11]  }
  0x18   :  { %s62_s13 = sshll.u32 %s2086_s12, 4  ;;  %s85_s15 = sshll.u32 %s2087_s14, 4  ;;  %s63_s13 = int_to_ptr.vmem [resolvable:$true] %s62_s13  ;;  %s86_s15 = int_to_ptr.vmem [resolvable:$true] %s85_s15 }
  0x19   :  { %s1827_s19 = scalar_lea.hbm %s2533_s3, 256 }
  0x1a   :  { %p1828_p8 = scmp.ne.s32.totalorder %s2533_s3, %s1827_s19  ;;  %p1831_p9 = scmp.lt.u32.totalorder %s1827_s19, %s2533_s3 }
  0x1c   :  { %p1833_p10 = pnand %p1831_p9, %p1828_p8 }
  0x1e   :  { %1836 = shalt.err (!%p1833_p10)
}
  0x1f   :  { %s1837_s1 = scalar_lea.vmem %s63_s13, 256  ;;  %p1842_p12 = scmp.lt.s32.totalorder %s63_s13, %s63_s13 }
  0x20   :  { %p1838_p11 = scmp.ne.s32.totalorder %s63_s13, %s1837_s1  ;;  %p1843_p13 = scmp.lt.s32.totalorder %s1837_s1, %s1837_s1 }
  0x22   :  { %p1844_p0 = por %p1843_p13, %p1842_p12 }
  0x24   :  { %p1845_p1 = pnand %p1844_p0, %p1838_p11 }
  0x26   :  { %1848 = shalt.err (!%p1845_p1)
}
  0x27   :  { %68 = dma.hbm_to_vmem [thread:$0]  %s2533_s3, 256, %s63_s13, [#allocation9], %s2084_s27, %s2084_s27, %s2085_s28  }
  0x28   :  { %s1849_s29 = scalar_lea.hbm %s2535_s5, 16 }
  0x29   :  { %p1850_p2 = scmp.ne.s32.totalorder %s2535_s5, %s1849_s29  ;;  %p1853_p3 = scmp.lt.u32.totalorder %s1849_s29, %s2535_s5 }
  0x2b   :  { %p1855_p4 = pnand %p1853_p3, %p1850_p2 }
  0x2d   :  { %1858 = shalt.err (!%p1855_p4)
}
  0x2e   :  { %s1859_s17 = scalar_lea.vmem %s86_s15, 16  ;;  %s1863_s19 = scalar_lea.vmem %s86_s15, 32 }
  0x2f   :  { %p1860_p5 = scmp.ne.s32.totalorder %s86_s15, %s1859_s17  ;;  %p1864_p6 = scmp.lt.s32.totalorder %s86_s15, %s86_s15 }
  0x30   :  { %p1865_p7 = scmp.lt.s32.totalorder %s1863_s19, %s1859_s17 }
  0x32   :  { %p1866_p8 = por %p1865_p7, %p1864_p6 }
  0x34   :  { %p1867_p9 = pnand %p1866_p8, %p1860_p5 }
  0x36   :  { %1870 = shalt.err (!%p1867_p9)
}
  0x37   :  { %88 = dma.hbm_to_vmem [thread:$0]  %s2535_s5, 16, %s86_s15, [#allocation12]  }
  0x38   :  { %s2088_s20 = smov [#allocation14]   ;;  %s2089_s22 = smov [#allocation17]  }
  0x39   :  { %s104_s21 = sshll.u32 %s2088_s20, 4  ;;  %s126_s23 = sshll.u32 %s2089_s22, 4  ;;  %s105_s21 = int_to_ptr.vmem [resolvable:$true] %s104_s21  ;;  %s127_s23 = int_to_ptr.vmem [resolvable:$true] %s126_s23 }
  0x3a   :  { %s1871_s24 = scalar_lea.hbm %s2537_s7, 256 }
  0x3b   :  { %p1872_p10 = scmp.ne.s32.totalorder %s2537_s7, %s1871_s24  ;;  %p1875_p11 = scmp.lt.u32.totalorder %s1871_s24, %s2537_s7 }
  0x3d   :  { %p1877_p12 = pnand %p1875_p11, %p1872_p10 }
  0x3f   :  { %1880 = shalt.err (!%p1877_p12)
}
  0x40   :  { %s1881_s5 = scalar_lea.vmem %s105_s21, 256  ;;  %p1886_p0 = scmp.lt.s32.totalorder %s105_s21, %s105_s21 }
  0x41   :  { %p1882_p13 = scmp.ne.s32.totalorder %s105_s21, %s1881_s5  ;;  %p1887_p1 = scmp.lt.s32.totalorder %s1881_s5, %s1881_s5 }
  0x43   :  { %p1888_p2 = por %p1887_p1, %p1886_p0 }
  0x45   :  { %p1889_p3 = pnand %p1888_p2, %p1882_p13 }
  0x47   :  { %1892 = shalt.err (!%p1889_p3)
}
  0x48   :  { %110 = dma.hbm_to_vmem [thread:$0]  %s2537_s7, 256, %s105_s21, [#allocation15], %s2084_s27, %s2084_s27, %s2085_s28  }
  0x49   :  { %s1893_s17 = scalar_lea.hbm %s2539_s9, 512 }
  0x4a   :  { %p1894_p4 = scmp.ne.s32.totalorder %s2539_s9, %s1893_s17  ;;  %p1897_p5 = scmp.lt.u32.totalorder %s1893_s17, %s2539_s9 }
  0x4c   :  { %p1899_p6 = pnand %p1897_p5, %p1894_p4 }
  0x4e   :  { %1902 = shalt.err (!%p1899_p6)
}
  0x4f   :  { %s1903_s22 = scalar_lea.vmem %s127_s23, 512  ;;  %p1908_p8 = scmp.lt.s32.totalorder %s127_s23, %s127_s23 }
  0x50   :  { %p1904_p7 = scmp.ne.s32.totalorder %s127_s23, %s1903_s22  ;;  %p1909_p9 = scmp.lt.s32.totalorder %s1903_s22, %s1903_s22 }
  0x52   :  { %p1910_p10 = por %p1909_p9, %p1908_p8 }
  0x54   :  { %p1911_p11 = pnand %p1910_p10, %p1904_p7 }
  0x56   :  { %1914 = shalt.err (!%p1911_p11)
}
  0x57   :  { %132 = dma.hbm_to_vmem [thread:$0]  %s2539_s9, 512, %s127_s23, [#allocation18], %s2084_s27, %s2084_s27, %s2085_s28  }
  0x58   :  { %s2090_s1 = smov [#allocation2]   ;;  %s1915_s26 = scalar_lea.hbm %s2530_s0, 256 }
  0x59   :  { %s28_s18 = sshll.u32 %s2090_s1, 4  ;;  %p1916_p12 = scmp.ne.s32.totalorder %s2530_s0, %s1915_s26  ;;  %s29_s18 = int_to_ptr.vmem [resolvable:$true] %s28_s18 }
  0x5a   :  { %p1919_p13 = scmp.lt.u32.totalorder %s1915_s26, %s2530_s0 }
  0x5c   :  { %p1921_p0 = pnand %p1919_p13, %p1916_p12 }
  0x5e   :  { %1924 = shalt.err (!%p1921_p0)
}
  0x5f   :  { %s1925_s12 = scalar_lea.vmem %s29_s18, 256  ;;  %p1930_p2 = scmp.lt.s32.totalorder %s29_s18, %s29_s18 }
  0x60   :  { %p1926_p1 = scmp.ne.s32.totalorder %s29_s18, %s1925_s12  ;;  %p1931_p3 = scmp.lt.s32.totalorder %s1925_s12, %s1925_s12 }
  0x62   :  { %p1932_p4 = por %p1931_p3, %p1930_p2 }
  0x64   :  { %p1933_p5 = pnand %p1932_p4, %p1926_p1 }
  0x66   :  { %1936 = shalt.err (!%p1933_p5)
}
  0x67   :  { %s2091_s9 = smov 128   ;;  %s2092_s28 = smov 8  }
  0x68   :  { %34 = dma.hbm_to_vmem [thread:$0]  %s2530_s0, 256, %s29_s18, [#allocation3], %s2091_s9, %s2091_s9, %s2092_s28  }
  0x69   :  { %s2093_s16 = smov [#allocation7]   ;;  %s2094_s19 = smov [#allocation10]  }
  0x6a   :  { %s53_s17 = sshll.u32 %s2093_s16, 4  ;;  %s75_s3 = sshll.u32 %s2094_s19, 4  ;;  %s54_s17 = int_to_ptr.vmem [resolvable:$true] %s53_s17  ;;  %s76_s3 = int_to_ptr.vmem [resolvable:$true] %s75_s3 }
  0x6b   :  { %s1937_s22 = scalar_lea.hbm %s2532_s2, 16 }
  0x6c   :  { %p1938_p6 = scmp.ne.s32.totalorder %s2532_s2, %s1937_s22  ;;  %p1941_p7 = scmp.lt.u32.totalorder %s1937_s22, %s2532_s2 }
  0x6e   :  { %p1943_p8 = pnand %p1941_p7, %p1938_p6 }
  0x70   :  { %1946 = shalt.err (!%p1943_p8)
}
  0x71   :  { %s1947_s0 = scalar_lea.vmem %s54_s17, 16  ;;  %s1951_s18 = scalar_lea.vmem %s54_s17, 32 }
  0x72   :  { %p1948_p9 = scmp.ne.s32.totalorder %s54_s17, %s1947_s0  ;;  %p1952_p10 = scmp.lt.s32.totalorder %s54_s17, %s54_s17 }
  0x73   :  { %p1953_p11 = scmp.lt.s32.totalorder %s1951_s18, %s1947_s0 }
  0x75   :  { %p1954_p12 = por %p1953_p11, %p1952_p10 }
  0x77   :  { %p1955_p13 = pnand %p1954_p12, %p1948_p9 }
  0x79   :  { %1958 = shalt.err (!%p1955_p13)
}
  0x7a   :  { %56 = dma.hbm_to_vmem [thread:$0]  %s2532_s2, 16, %s54_s17, [#allocation6]  }
  0x7b   :  { %s1959_s5 = scalar_lea.hbm %s2534_s4, 16 }
  0x7c   :  { %p1960_p0 = scmp.ne.s32.totalorder %s2534_s4, %s1959_s5  ;;  %p1963_p1 = scmp.lt.u32.totalorder %s1959_s5, %s2534_s4 }
  0x7e   :  { %p1965_p2 = pnand %p1963_p1, %p1960_p0 }
  0x80   :  { %1968 = shalt.err (!%p1965_p2)
}
  0x81   :  { %s1969_s16 = scalar_lea.vmem %s76_s3, 16  ;;  %s1973_s19 = scalar_lea.vmem %s76_s3, 32 }
  0x82   :  { %p1970_p3 = scmp.ne.s32.totalorder %s76_s3, %s1969_s16  ;;  %p1974_p4 = scmp.lt.s32.totalorder %s76_s3, %s76_s3 }
  0x83   :  { %p1975_p5 = scmp.lt.s32.totalorder %s1973_s19, %s1969_s16 }
  0x85   :  { %p1976_p6 = por %p1975_p5, %p1974_p4 }
  0x87   :  { %p1977_p7 = pnand %p1976_p6, %p1970_p3 }
  0x89   :  { %1980 = shalt.err (!%p1977_p7)
}
  0x8a   :  { %78 = dma.hbm_to_vmem [thread:$0]  %s2534_s4, 16, %s76_s3, [#allocation9]  }
  0x8b   :  { %s2095_s13 = smov [#allocation13]   ;;  %s2096_s22 = smov [#allocation16]  }
  0x8c   :  { %s95_s20 = sshll.u32 %s2095_s13, 4  ;;  %s117_s7 = sshll.u32 %s2096_s22, 4  ;;  %s96_s20 = int_to_ptr.vmem [resolvable:$true] %s95_s20  ;;  %s118_s7 = int_to_ptr.vmem [resolvable:$true] %s117_s7 }
  0x8d   :  { %s1981_s24 = scalar_lea.hbm %s2536_s6, 16 }
  0x8e   :  { %p1982_p8 = scmp.ne.s32.totalorder %s2536_s6, %s1981_s24  ;;  %p1985_p9 = scmp.lt.u32.totalorder %s1981_s24, %s2536_s6 }
  0x90   :  { %p1987_p10 = pnand %p1985_p9, %p1982_p8 }
  0x92   :  { %1990 = shalt.err (!%p1987_p10)
}
  0x93   :  { %s1991_s4 = scalar_lea.vmem %s96_s20, 16  ;;  %s1995_s3 = scalar_lea.vmem %s96_s20, 32 }
  0x94   :  { %p1992_p11 = scmp.ne.s32.totalorder %s96_s20, %s1991_s4  ;;  %p1996_p12 = scmp.lt.s32.totalorder %s96_s20, %s96_s20 }
  0x95   :  { %p1997_p13 = scmp.lt.s32.totalorder %s1995_s3, %s1991_s4 }
  0x97   :  { %p1998_p0 = por %p1997_p13, %p1996_p12 }
  0x99   :  { %p1999_p1 = pnand %p1998_p0, %p1992_p11 }
  0x9b   :  { %2002 = shalt.err (!%p1999_p1)
}
  0x9c   :  { %98 = dma.hbm_to_vmem [thread:$0]  %s2536_s6, 16, %s96_s20, [#allocation12]  }
  0x9d   :  { %s2003_s12 = scalar_lea.hbm %s2538_s8, 16 }
  0x9e   :  { %p2004_p2 = scmp.ne.s32.totalorder %s2538_s8, %s2003_s12  ;;  %p2007_p3 = scmp.lt.u32.totalorder %s2003_s12, %s2538_s8 }
  0xa0   :  { %p2009_p4 = pnand %p2007_p3, %p2004_p2 }
  0xa2   :  { %2012 = shalt.err (!%p2009_p4)
}
  0xa3   :  { %s2013_s2 = scalar_lea.vmem %s118_s7, 16  ;;  %s2017_s17 = scalar_lea.vmem %s118_s7, 32 }
  0xa4   :  { %p2014_p5 = scmp.ne.s32.totalorder %s118_s7, %s2013_s2  ;;  %p2018_p6 = scmp.lt.s32.totalorder %s118_s7, %s118_s7 }
  0xa5   :  { %p2019_p7 = scmp.lt.s32.totalorder %s2017_s17, %s2013_s2 }
  0xa7   :  { %p2020_p8 = por %p2019_p7, %p2018_p6 }
  0xa9   :  { %p2021_p9 = pnand %p2020_p8, %p2014_p5 }
  0xab   :  { %2024 = shalt.err (!%p2021_p9)
}
  0xac   :  { %120 = dma.hbm_to_vmem [thread:$0]  %s2538_s8, 16, %s118_s7, [#allocation15]  }
  0xad   :  { %s2097_s20 = smov [#allocation19]   ;;  %s2025_s24 = scalar_lea.hbm %s2540_s10, 16 }
  0xae   :  { %s139_s22 = sshll.u32 %s2097_s20, 4  ;;  %p2026_p10 = scmp.ne.s32.totalorder %s2540_s10, %s2025_s24  ;;  %s140_s22 = int_to_ptr.vmem [resolvable:$true] %s139_s22 }
  0xaf   :  { %p2029_p11 = scmp.lt.u32.totalorder %s2025_s24, %s2540_s10 }
  0xb1   :  { %p2031_p12 = pnand %p2029_p11, %p2026_p10 }
  0xb3   :  { %2034 = shalt.err (!%p2031_p12)
}
  0xb4   :  { %s2035_s4 = scalar_lea.vmem %s140_s22, 16  ;;  %s2039_s8 = scalar_lea.vmem %s140_s22, 32 }
  0xb5   :  { %p2036_p13 = scmp.ne.s32.totalorder %s140_s22, %s2035_s4  ;;  %p2040_p0 = scmp.lt.s32.totalorder %s140_s22, %s140_s22 }
  0xb6   :  { %p2041_p1 = scmp.lt.s32.totalorder %s2039_s8, %s2035_s4 }
  0xb8   :  { %p2042_p2 = por %p2041_p1, %p2040_p0 }
  0xba   :  { %p2043_p3 = pnand %p2042_p2, %p2036_p13 }
  0xbc   :  { %2046 = shalt.err (!%p2043_p3)
}
  0xbd   :  { %142 = dma.hbm_to_vmem [thread:$0]  %s2540_s10, 16, %s140_s22, [#allocation18]  }
  0xbe   :  { %2069 = dma.done.wait [#allocation3], 256  }
  0xbf   :  { %2070 = vsyncadd [#allocation3], 4294967040 }
  0xc0   :  { %2071 = dma.done.wait [#allocation6], 272  }
  0xc1   :  { %2072 = vsyncadd [#allocation6], 4294967024 }
  0xc2   :  { %2073 = dma.done.wait [#allocation9], 272  }
  0xc3   :  { %2074 = vsyncadd [#allocation9], 4294967024 }
  0xc4   :  { %2075 = dma.done.wait [#allocation12], 32  }
  0xc5   :  { %2076 = vsyncadd [#allocation12], 4294967264 }
  0xc6   :  { %2077 = dma.done.wait [#allocation15], 272  }
  0xc7   :  { %2078 = vsyncadd [#allocation15], 4294967024 }
  0xc8   :  { %2079 = dma.done.wait [#allocation18], 528  }
  0xc9   :  { %2080 = vsyncadd [#allocation18], 4294966768  ;;  %v2098_v0 = vmov 0.0   ;;  %vm2099_vm0 = vmmov 0   ;;  %v1755_v1 = vld [vmem:[#allocation5] sm:$0xff]   ;;  %v1756_v2 = vld [vmem:[#allocation5 + $0x8] sm:$0xff]  }
  0xca   :  { %1578 = vmatprep.subr.bf16.mxu0 %v2098_v0  ;;  %1582 = vmatprep.mubr.msk.bf16.mxu0 %vm2099_vm0, %v2098_v0  ;;  %v2326_v3 = vld [vmem:[#allocation2] sm:$0xff]  ;;  %v2328_v4 = vld [vmem:[#allocation2 + $0x8] sm:$0xff]  ;;  %vm208_vm1 = vcmask 261120   ;;  %s2100_s10 = smov 96   ;;  %vm258_vm2 = vcmask 64512   ;;  %s2101_s29 = smov 88  }
  0xcb   :  { %1586 = vmatprep.subr.bf16.mxu1 %v2098_v0  ;;  %1588 = vmatprep.mubr.msk.bf16.mxu1 %vm2099_vm0, %v2098_v0  ;;  %v185_v5 = vpack.c.bf16 %v2328_v4, %v2326_v3  ;;  %v1496_v6 = vld [vmem:[#allocation7] ss:$0 sm:$0xff]  ;;  %vm385_vm3 = vcmask 1043456   ;;  %s2103_s30 = smov 56   ;;  %s2104_s5 = smov 80   ;;  %vm1169_vm4 = vcmask 130048  }
  0xcc   :  { %1579 = vmatpush3.bf16.msra.mxu0 %v1755_v1  ;;  %s2105_s15 = smov 112   ;;  %s2106_s12 = smov 48   ;;  %vm1172_vm5 = vcmask 195584   ;;  %vm1395_vm6 = vcmask 523264  }
  0xcd   :  { %1580 = vmatprep.subr.bf16.mxu0 %v2098_v0  ;;  %s2107_s23 = smov 72   ;;  %s2108_s14 = smov 104  }
  0xce   :  { %s2109_s16 = smov 40   ;;  %s2110_s19 = smov 16  }
  0xcf   :  { %s2111_s2 = smov 24   ;;  %s2112_s17 = smov [#allocation20]  }
  0xd0   :  { %1581 = vmatpush3.bf16.msra.mxu0 %v1756_v2  ;;  %s1479_s6 = sshll.u32 %s2112_s17, 4  ;;  %s1480_s6 = int_to_ptr.vmem [resolvable:$true] %s1479_s6 }
  0xd1   :  { %1592 = vmatprep.subr.bf16.mxu0 %v2098_v0  ;;  %s2047_s13 = scalar_lea.vmem %s1480_s6, 256  ;;  %p2052_p5 = scmp.lt.s32.totalorder %s1480_s6, %s1480_s6 }
  0xd2   :  { %p2048_p4 = scmp.ne.s32.totalorder %s1480_s6, %s2047_s13  ;;  %p2053_p6 = scmp.lt.s32.totalorder %s2047_s13, %s2047_s13 }
  0xd3   :  { %1583 = vmatmul.mubr.msk.bf16.vlgmr.msra.gmra.mrb[0].mxu0 %vm208_vm1, %v185_v5 }
  0xd4   :  { %1594 = vmatprep.mubr.msk.bf16.mxu0 %vm2099_vm0, %v2098_v0  ;;  %p2054_p7 = por %p2053_p6, %p2052_p5 }
  0xd6   :  { %p2055_p8 = pnand %p2054_p7, %p2048_p4 }
 0x1a6   :  { %v246_v7 = vpop.f32.mrb[0].mxu0 }
 0x1a7   :  { %v247_v8 = vadd.f32 %v1496_v6, %v246_v7  ;;  %v1584_v9 = vpop.f32.mrb[1].mxu0 }
 0x1a8   :  { %v249_v10 = vpop.f32.mrb[2].mxu0 }
 0x1a9   :  { %v2337_v11 = vpack.c.bf16 %v247_v8, %v247_v8  ;;  %v250_v12 = vadd.f32 %v1496_v6, %v249_v10  ;;  %v1585_v13 = vpop.f32.mrb[3].mxu0 }
 0x1ab   :  { %256 = vrot.lane.b32.xlu0 %v2337_v11, %s2100_s10  ;;  %v2340_v14 = vpack.c.bf16 %v250_v12, %v250_v12 }
 0x1af   :  { %306 = vrot.lane.b32.xlu0 %v2340_v14, %s2100_s10 }
 0x21d   :  { %v257_v15 = vpop.permute.xlu0 %256 }
 0x21e   :  { %v263_v16 = vsel %vm258_vm2, %v257_v15, 0 }
 0x21f   :  { %1587 = vmatpush3.bf16.xpose.msra.mxu1 %v263_v16 }
 0x220   :  { %1598 = vmatprep.subr.bf16.mxu1 %v2098_v0 }
 0x221   :  { %v307_v17 = vpop.permute.xlu0 %306 }
 0x222   :  { %v312_v18 = vsel %vm258_vm2, %v307_v17, 0 }
 0x223   :  { %1593 = vmatpush3.bf16.xpose.msra.mxu0 %v312_v18 }
 0x224   :  { %1604 = vmatprep.subr.bf16.mxu0 %v2098_v0 }
 0x226   :  { %1589 = vmatmul.mubr.msk.bf16.vlgmr.msra.gmra.mrb[0].mxu1 %vm258_vm2, %v2337_v11 }
 0x227   :  { %1600 = vmatprep.mubr.msk.bf16.mxu1 %vm2099_vm0, %v2098_v0 }
 0x22a   :  { %1595 = vmatmul.mubr.msk.bf16.vlgmr.msra.gmra.mrb[4].mxu0 %vm258_vm2, %v2340_v14 }
 0x22b   :  { %1606 = vmatprep.mubr.msk.bf16.mxu0 %vm2099_vm0, %v2098_v0 }
 0x2f9   :  { %v299_v19 = vpop.f32.mrb[0].mxu1 }
 0x2fa   :  { %v354_v20 = vmul.f32 0.35355338, %v299_v19  ;;  %v1590_v21 = vpop.f32.mrb[1].mxu1 }
 0x2fb   :  { %v302_v22 = vpop.f32.mrb[2].mxu1 }
 0x2fc   :  { %v1591_v23 = vpop.f32.mrb[3].mxu1  ;;  %v356_v24 = vsel %vm258_vm2, %v354_v20, -inf }
 0x2fd   :  { %357 = vmax.xlane.f32.xlu1 %v356_v24  ;;  %v348_v25 = vpop.f32.mrb[4].mxu0 }
 0x2fe   :  { %v355_v26 = vmul.f32 0.35355338, %v348_v25  ;;  %v1596_v27 = vpop.f32.mrb[5].mxu0 }
 0x2ff   :  { %v351_v28 = vpop.f32.mrb[6].mxu0 }
 0x300   :  { %v1597_v29 = vpop.f32.mrb[7].mxu0  ;;  %v359_v30 = vsel %vm258_vm2, %v355_v26, -inf }
 0x301   :  { %360 = vmax.xlane.f32.xlu1 %v359_v30 }
 0x312   :  { %380 = vrot.lane.b32.xlu1 %v2337_v11, %s2084_s27 }
 0x316   :  { %429 = vrot.lane.b32.xlu1 %v2340_v14, %s2084_s27  ;;  %s2102_s27 = smov 120  }
 0x31a   :  { %479 = vrot.lane.b32.xlu1 %v2337_v11, %s2101_s29 }
 0x38a   :  { %v358_v31 = vpop.xlane.xlu1 %357 }
 0x38b   :  { %v362_v32 = vsub.f32 %v354_v20, %v358_v31 }
 0x38d   :  { %v364_v33 = vmul.f32 1.442695, %v362_v32 }
 0x38e   :  { %v361_v34 = vpop.xlane.xlu1 %360 }
 0x38f   :  { %1765 = vpow2.f32 %v364_v33  ;;  %v363_v35 = vsub.f32 %v355_v26, %v361_v34 }
 0x391   :  { %v366_v36 = vmul.f32 1.442695, %v363_v35 }
 0x392   :  { %v381_v37 = vpop.permute.xlu1 %380 }
 0x393   :  { %1767 = vpow2.f32 %v366_v36  ;;  %v387_v38 = vsel %vm385_vm3, %v381_v37, 0 }
 0x394   :  { %1599 = vmatpush3.bf16.msra.mxu1 %v387_v38 }
 0x395   :  { %1610 = vmatprep.subr.bf16.mxu1 %v2098_v0 }
 0x396   :  { %v430_v39 = vpop.permute.xlu1 %429 }
 0x397   :  { %v435_v40 = vsel %vm385_vm3, %v430_v39, 0 }
 0x398   :  { %1605 = vmatpush3.bf16.msra.mxu0 %v435_v40 }
 0x399   :  { %v1766_v41 = vpop.eup %1765  ;;  %1616 = vmatprep.subr.bf16.mxu0 %v2098_v0 }
 0x39a   :  { %v368_v42 = vsel %vm258_vm2, %v1766_v41, 0.0  ;;  %v480_v45 = vpop.permute.xlu1 %479 }
 0x39b   :  { %369 = vadd.xlane.f32.xlu0 %v368_v42  ;;  %v485_v52 = vsel %vm258_vm2, %v480_v45, 0 }
 0x39d   :  { %v1768_v43 = vpop.eup %1767 }
 0x39e   :  { %v371_v44 = vsel %vm258_vm2, %v1768_v43, 0.0 }
 0x39f   :  { %372 = vadd.xlane.f32.xlu1 %v371_v44 }
 0x3b0   :  { %529 = vrot.lane.b32.xlu1 %v2340_v14, %s2101_s29 }
 0x3b1   :  { %477 = vrot.lane.b32.xlu0 %v2337_v11, %s2102_s27 }
 0x3b4   :  { %527 = vrot.lane.b32.xlu1 %v2340_v14, %s2102_s27 }
 0x428   :  { %v370_v46 = vpop.xlane.xlu0 %369 }
 0x429   :  { %1769 = vrcp.f32 %v370_v46 }
 0x42c   :  { %v373_v47 = vpop.xlane.xlu1 %372  ;;  %v478_v57 = vpop.permute.xlu0 %477 }
 0x42d   :  { %1771 = vrcp.f32 %v373_v47 }
 0x430   :  { %v530_v54 = vpop.permute.xlu1 %529 }
 0x431   :  { %v535_v56 = vsel %vm258_vm2, %v530_v54, 0 }
 0x433   :  { %v1770_v48 = vpop.eup %1769 }
 0x434   :  { %v376_v49 = vmul.f32 %v1770_v48, %v1766_v41  ;;  %v528_v58 = vpop.permute.xlu1 %527 }
 0x436   :  { %v378_v50 = vpack.c.bf16 %v376_v49, %v376_v49 }
 0x437   :  { %v1772_v51 = vpop.eup %1771 }
 0x438   :  { %v377_v53 = vmul.f32 %v1772_v51, %v1768_v43  ;;  %1601 = vmatmul.mubr.msk.bf16.vlgmr.msra.gmra.mrb[4].mxu1 %vm258_vm2, %v378_v50 }
 0x439   :  { %1611 = vmatpush3.bf16.xpose.msra.mxu1 %v485_v52  ;;  %1612 = vmatprep.mubr.msk.bf16.mxu1 %vm2099_vm0, %v2098_v0 }
 0x43a   :  { %v379_v55 = vpack.c.bf16 %v377_v53, %v377_v53  ;;  %1622 = vmatprep.subr.bf16.mxu1 %v2098_v0 }
 0x43c   :  { %1607 = vmatmul.mubr.msk.bf16.vlgmr.msra.gmra.mrb[8].mxu0 %vm258_vm2, %v379_v55 }
 0x43d   :  { %1617 = vmatpush3.bf16.xpose.msra.mxu0 %v535_v56  ;;  %1618 = vmatprep.mubr.msk.bf16.mxu0 %vm2099_vm0, %v2098_v0 }
 0x43e   :  { %1628 = vmatprep.subr.bf16.mxu0 %v2098_v0 }
 0x440   :  { %1613 = vmatmul.mubr.msk.bf16.vlgmr.msra.gmra.mrb[8].mxu1 %vm258_vm2, %v478_v57 }
 0x441   :  { %1624 = vmatprep.mubr.msk.bf16.mxu1 %vm2099_vm0, %v2098_v0 }
 0x444   :  { %1619 = vmatmul.mubr.msk.bf16.vlgmr.msra.gmra.mrb[12].mxu0 %vm258_vm2, %v528_v58 }
 0x445   :  { %1630 = vmatprep.mubr.msk.bf16.mxu0 %vm2099_vm0, %v2098_v0 }
 0x50b   :  { %v2387_v59 = vpop.f32.mrb[4].mxu1 }
 0x50c   :  { %v1602_v60 = vpop.f32.mrb[5].mxu1 }
 0x50d   :  { %v426_v61 = vpop.f32.mrb[6].mxu1 }
 0x50e   :  { %v1603_v62 = vpop.f32.mrb[7].mxu1 }
 0x50f   :  { %v2389_v63 = vpop.f32.mrb[8].mxu0 }
 0x510   :  { %v1608_v1 = vpop.f32.mrb[9].mxu0 }
 0x511   :  { %v474_v2 = vpop.f32.mrb[10].mxu0 }
 0x512   :  { %v1609_v5 = vpop.f32.mrb[11].mxu0 }
 0x513   :  { %v521_v6 = vpop.f32.mrb[8].mxu1 }
 0x514   :  { %v577_v7 = vmul.f32 0.35355338, %v521_v6  ;;  %v1614_v8 = vpop.f32.mrb[9].mxu1 }
 0x515   :  { %v524_v9 = vpop.f32.mrb[10].mxu1 }
 0x516   :  { %v1615_v10 = vpop.f32.mrb[11].mxu1  ;;  %v579_v12 = vsel %vm258_vm2, %v577_v7, -inf }
 0x517   :  { %580 = vmax.xlane.f32.xlu1 %v579_v12  ;;  %v571_v13 = vpop.f32.mrb[12].mxu0 }
 0x518   :  { %v578_v15 = vmul.f32 0.35355338, %v571_v13  ;;  %v1620_v16 = vpop.f32.mrb[13].mxu0 }
 0x519   :  { %v574_v17 = vpop.f32.mrb[14].mxu0 }
 0x51a   :  { %v1621_v18 = vpop.f32.mrb[15].mxu0  ;;  %v582_v19 = vsel %vm258_vm2, %v578_v15, -inf }
 0x51b   :  { %583 = vmax.xlane.f32.xlu0 %v582_v19 }
 0x528   :  { %603 = vrot.lane.b32.xlu1 %v2337_v11, %s2103_s30 }
 0x52c   :  { %701 = vrot.lane.b32.xlu1 %v2337_v11, %s2104_s5 }
 0x531   :  { %651 = vrot.lane.b32.xlu0 %v2340_v14, %s2103_s30 }
 0x535   :  { %699 = vrot.lane.b32.xlu0 %v2337_v11, %s2105_s15 }
 0x5a4   :  { %v581_v20 = vpop.xlane.xlu1 %580 }
 0x5a5   :  { %v585_v21 = vsub.f32 %v577_v7, %v581_v20 }
 0x5a7   :  { %v587_v22 = vmul.f32 1.442695, %v585_v21 }
 0x5a8   :  { %v604_v23 = vpop.permute.xlu1 %603  ;;  %v584_v24 = vpop.xlane.xlu0 %583 }
 0x5a9   :  { %1773 = vpow2.f32 %v587_v22  ;;  %v609_v25 = vsel %vm385_vm3, %v604_v23, 0  ;;  %v586_v26 = vsub.f32 %v578_v15, %v584_v24 }
 0x5aa   :  { %1623 = vmatpush3.bf16.msra.mxu1 %v609_v25 }
 0x5ab   :  { %v589_v27 = vmul.f32 1.442695, %v586_v26  ;;  %1634 = vmatprep.subr.bf16.mxu1 %v2098_v0 }
 0x5ac   :  { %v652_v28 = vpop.permute.xlu0 %651  ;;  %v702_v34 = vpop.permute.xlu1 %701 }
 0x5ad   :  { %1775 = vpow2.f32 %v589_v27  ;;  %v657_v29 = vsel %vm385_vm3, %v652_v28, 0  ;;  %v707_v41 = vsel %vm258_vm2, %v702_v34, 0 }
 0x5ae   :  { %1629 = vmatpush3.bf16.msra.mxu0 %v657_v29 }
 0x5af   :  { %1640 = vmatprep.subr.bf16.mxu0 %v2098_v0 }
 0x5b0   :  { %v700_v46 = vpop.permute.xlu0 %699 }
 0x5b3   :  { %v1774_v30 = vpop.eup %1773 }
 0x5b4   :  { %v591_v31 = vsel %vm258_vm2, %v1774_v30, 0.0 }
 0x5b5   :  { %592 = vadd.xlane.f32.xlu1 %v591_v31 }
 0x5b7   :  { %v1776_v32 = vpop.eup %1775 }
 0x5b8   :  { %v594_v33 = vsel %vm258_vm2, %v1776_v32, 0.0 }
 0x5b9   :  { %595 = vadd.xlane.f32.xlu1 %v594_v33 }
 0x5ca   :  { %751 = vrot.lane.b32.xlu1 %v2340_v14, %s2104_s5 }
 0x5ce   :  { %749 = vrot.lane.b32.xlu1 %v2340_v14, %s2105_s15 }
 0x642   :  { %v593_v35 = vpop.xlane.xlu1 %592 }
 0x643   :  { %1777 = vrcp.f32 %v593_v35 }
 0x646   :  { %v596_v36 = vpop.xlane.xlu1 %595 }
 0x647   :  { %1779 = vrcp.f32 %v596_v36 }
 0x64a   :  { %v752_v43 = vpop.permute.xlu1 %751 }
 0x64b   :  { %v757_v45 = vsel %vm258_vm2, %v752_v43, 0 }
 0x64d   :  { %v1778_v37 = vpop.eup %1777 }
 0x64e   :  { %v599_v38 = vmul.f32 %v1778_v37, %v1774_v30  ;;  %v750_v47 = vpop.permute.xlu1 %749 }
 0x650   :  { %v601_v39 = vpack.c.bf16 %v599_v38, %v599_v38 }
 0x651   :  { %v1780_v40 = vpop.eup %1779 }
 0x652   :  { %v600_v42 = vmul.f32 %v1780_v40, %v1776_v32  ;;  %1625 = vmatmul.mubr.msk.bf16.vlgmr.msra.gmra.mrb[12].mxu1 %vm258_vm2, %v601_v39 }
 0x653   :  { %1635 = vmatpush3.bf16.xpose.msra.mxu1 %v707_v41  ;;  %1636 = vmatprep.mubr.msk.bf16.mxu1 %vm2099_vm0, %v2098_v0 }
 0x654   :  { %v602_v44 = vpack.c.bf16 %v600_v42, %v600_v42  ;;  %1646 = vmatprep.subr.bf16.mxu1 %v2098_v0 }
 0x656   :  { %1631 = vmatmul.mubr.msk.bf16.vlgmr.msra.gmra.mrb[16].mxu0 %vm258_vm2, %v602_v44 }
 0x657   :  { %1641 = vmatpush3.bf16.xpose.msra.mxu0 %v757_v45  ;;  %1642 = vmatprep.mubr.msk.bf16.mxu0 %vm2099_vm0, %v2098_v0 }
 0x658   :  { %1652 = vmatprep.subr.bf16.mxu0 %v2098_v0 }
 0x65a   :  { %1637 = vmatmul.mubr.msk.bf16.vlgmr.msra.gmra.mrb[16].mxu1 %vm258_vm2, %v700_v46 }
 0x65b   :  { %1648 = vmatprep.mubr.msk.bf16.mxu1 %vm2099_vm0, %v2098_v0 }
 0x65e   :  { %1643 = vmatmul.mubr.msk.bf16.vlgmr.msra.gmra.mrb[20].mxu0 %vm258_vm2, %v750_v47 }
 0x65f   :  { %1654 = vmatprep.mubr.msk.bf16.mxu0 %vm2099_vm0, %v2098_v0 }
 0x725   :  { %v2421_v48 = vpop.f32.mrb[12].mxu1 }
 0x726   :  { %v1626_v49 = vpop.f32.mrb[13].mxu1 }
 0x727   :  { %v648_v50 = vpop.f32.mrb[14].mxu1 }
 0x728   :  { %v1627_v51 = vpop.f32.mrb[15].mxu1 }
 0x729   :  { %v2423_v52 = vpop.f32.mrb[16].mxu0 }
 0x72a   :  { %v1740_v53 = vpack.i.bf16 %v2423_v52, %v2421_v48  ;;  %v1632_v54 = vpop.f32.mrb[17].mxu0 }
 0x72b   :  { %v696_v55 = vpop.f32.mrb[18].mxu0 }
 0x72c   :  { %v1633_v56 = vpop.f32.mrb[19].mxu0 }
 0x72d   :  { %v743_v57 = vpop.f32.mrb[16].mxu1 }
 0x72e   :  { %v799_v58 = vmul.f32 0.35355338, %v743_v57  ;;  %v1638_v60 = vpop.f32.mrb[17].mxu1 }
 0x72f   :  { %v746_v61 = vpop.f32.mrb[18].mxu1 }
 0x730   :  { %v1639_v62 = vpop.f32.mrb[19].mxu1  ;;  %v801_v1 = vsel %vm258_vm2, %v799_v58, -inf }
 0x731   :  { %802 = vmax.xlane.f32.xlu0 %v801_v1  ;;  %v793_v2 = vpop.f32.mrb[20].mxu0 }
 0x732   :  { %v800_v5 = vmul.f32 0.35355338, %v793_v2  ;;  %v1644_v6 = vpop.f32.mrb[21].mxu0 }
 0x733   :  { %v796_v7 = vpop.f32.mrb[22].mxu0 }
 0x734   :  { %v1645_v8 = vpop.f32.mrb[23].mxu0  ;;  %v804_v9 = vsel %vm258_vm2, %v800_v5, -inf }
 0x735   :  { %805 = vmax.xlane.f32.xlu1 %v804_v9 }
 0x746   :  { %825 = vrot.lane.b32.xlu1 %v2337_v11, %s2106_s12 }
 0x74a   :  { %923 = vrot.lane.b32.xlu1 %v2337_v11, %s2107_s23 }
 0x74e   :  { %973 = vrot.lane.b32.xlu1 %v2340_v14, %s2107_s23 }
 0x752   :  { %971 = vrot.lane.b32.xlu1 %v2340_v14, %s2108_s14 }
 0x7be   :  { %v803_v10 = vpop.xlane.xlu0 %802 }
 0x7bf   :  { %v807_v12 = vsub.f32 %v799_v58, %v803_v10 }
 0x7c1   :  { %v809_v13 = vmul.f32 1.442695, %v807_v12 }
 0x7c2   :  { %v806_v15 = vpop.xlane.xlu1 %805 }
 0x7c3   :  { %1781 = vpow2.f32 %v809_v13  ;;  %v808_v16 = vsub.f32 %v800_v5, %v806_v15 }
 0x7c5   :  { %v811_v17 = vmul.f32 1.442695, %v808_v16 }
 0x7c6   :  { %v826_v18 = vpop.permute.xlu1 %825 }
 0x7c7   :  { %1783 = vpow2.f32 %v811_v17  ;;  %v831_v19 = vsel %vm385_vm3, %v826_v18, 0 }
 0x7c8   :  { %1647 = vmatpush3.bf16.msra.mxu1 %v831_v19 }
 0x7c9   :  { %1658 = vmatprep.subr.bf16.mxu1 %v2098_v0 }
 0x7ca   :  { %v924_v29 = vpop.permute.xlu1 %923 }
 0x7cb   :  { %v929_v33 = vsel %vm258_vm2, %v924_v29, 0 }
 0x7cd   :  { %v1782_v20 = vpop.eup %1781 }
 0x7ce   :  { %v813_v21 = vsel %vm258_vm2, %v1782_v20, 0.0  ;;  %v974_v35 = vpop.permute.xlu1 %973 }
 0x7cf   :  { %814 = vadd.xlane.f32.xlu0 %v813_v21  ;;  %v979_v37 = vsel %vm258_vm2, %v974_v35, 0 }
 0x7d1   :  { %v1784_v22 = vpop.eup %1783 }
 0x7d2   :  { %v816_v23 = vsel %vm258_vm2, %v1784_v22, 0.0  ;;  %v972_v39 = vpop.permute.xlu1 %971 }
 0x7d3   :  { %817 = vadd.xlane.f32.xlu0 %v816_v23 }
 0x7e9   :  { %873 = vrot.lane.b32.xlu0 %v2340_v14, %s2106_s12 }
 0x7ed   :  { %921 = vrot.lane.b32.xlu0 %v2337_v11, %s2108_s14 }
 0x85c   :  { %v815_v24 = vpop.xlane.xlu0 %814 }
 0x85d   :  { %1785 = vrcp.f32 %v815_v24  ;;  %v1757_v24 = vld [vmem:[#allocation8] sm:$0xff]  }
 0x860   :  { %v818_v25 = vpop.xlane.xlu0 %817 }
 0x861   :  { %1787 = vrcp.f32 %v818_v25  ;;  %v1758_v25 = vld [vmem:[#allocation8 + $0x8] sm:$0xff]  }
 0x864   :  { %v874_v26 = vpop.permute.xlu0 %873 }
 0x865   :  { %v879_v27 = vsel %vm385_vm3, %v874_v26, 0 }
 0x866   :  { %1653 = vmatpush3.bf16.msra.mxu0 %v879_v27 }
 0x867   :  { %v1786_v28 = vpop.eup %1785  ;;  %1664 = vmatprep.subr.bf16.mxu0 %v2098_v0 }
 0x868   :  { %v821_v30 = vmul.f32 %v1786_v28, %v1782_v20  ;;  %v922_v38 = vpop.permute.xlu0 %921 }
 0x86a   :  { %v823_v31 = vpack.c.bf16 %v821_v30, %v821_v30 }
 0x86b   :  { %v1788_v32 = vpop.eup %1787 }
 0x86c   :  { %v822_v34 = vmul.f32 %v1788_v32, %v1784_v22  ;;  %1649 = vmatmul.mubr.msk.bf16.vlgmr.msra.gmra.mrb[20].mxu1 %vm258_vm2, %v823_v31 }
 0x86d   :  { %1659 = vmatpush3.bf16.xpose.msra.mxu1 %v929_v33  ;;  %1660 = vmatprep.mubr.msk.bf16.mxu1 %vm2099_vm0, %v2098_v0 }
 0x86e   :  { %v824_v36 = vpack.c.bf16 %v822_v34, %v822_v34  ;;  %1670 = vmatprep.subr.bf16.mxu1 %v2098_v0 }
 0x870   :  { %1655 = vmatmul.mubr.msk.bf16.vlgmr.msra.gmra.mrb[24].mxu0 %vm258_vm2, %v824_v36 }
 0x871   :  { %1665 = vmatpush3.bf16.xpose.msra.mxu0 %v979_v37  ;;  %1666 = vmatprep.mubr.msk.bf16.mxu0 %vm2099_vm0, %v2098_v0 }
 0x872   :  { %1676 = vmatprep.subr.bf16.mxu0 %v2098_v0 }
 0x874   :  { %1661 = vmatmul.mubr.msk.bf16.vlgmr.msra.gmra.mrb[24].mxu1 %vm258_vm2, %v922_v38 }
 0x875   :  { %1672 = vmatprep.mubr.msk.bf16.mxu1 %vm2099_vm0, %v2098_v0 }
 0x878   :  { %1667 = vmatmul.mubr.msk.bf16.vlgmr.msra.gmra.mrb[28].mxu0 %vm258_vm2, %v972_v39 }
 0x879   :  { %1678 = vmatprep.mubr.msk.bf16.mxu0 %vm2099_vm0, %v2098_v0 }
 0x93f   :  { %v867_v40 = vpop.f32.mrb[20].mxu1 }
 0x940   :  { %v1650_v41 = vpop.f32.mrb[21].mxu1 }
 0x941   :  { %v870_v42 = vpop.f32.mrb[22].mxu1 }
 0x942   :  { %v1651_v43 = vpop.f32.mrb[23].mxu1 }
 0x943   :  { %v915_v44 = vpop.f32.mrb[24].mxu0 }
 0x944   :  { %v1745_v45 = vpack.i.bf16 %v915_v44, %v867_v40  ;;  %v1656_v46 = vpop.f32.mrb[25].mxu0 }
 0x945   :  { %v918_v47 = vpop.f32.mrb[26].mxu0 }
 0x946   :  { %v1657_v49 = vpop.f32.mrb[27].mxu0 }
 0x947   :  { %v965_v50 = vpop.f32.mrb[24].mxu1 }
 0x948   :  { %v1021_v51 = vmul.f32 0.35355338, %v965_v50  ;;  %v1662_v54 = vpop.f32.mrb[25].mxu1 }
 0x949   :  { %v968_v55 = vpop.f32.mrb[26].mxu1  ;;  %v1516_v54 = vld [vmem:[#allocation10] ss:$0 sm:$0xff] }
 0x94a   :  { %v1663_v56 = vpop.f32.mrb[27].mxu1  ;;  %v1023_v57 = vsel %vm258_vm2, %v1021_v51, -inf }
 0x94b   :  { %1024 = vmax.xlane.f32.xlu0 %v1023_v57  ;;  %v1015_v58 = vpop.f32.mrb[28].mxu0 }
 0x94c   :  { %v1022_v60 = vmul.f32 0.35355338, %v1015_v58  ;;  %v1668_v61 = vpop.f32.mrb[29].mxu0 }
 0x94d   :  { %v1018_v62 = vpop.f32.mrb[30].mxu0 }
 0x94e   :  { %v1669_v1 = vpop.f32.mrb[31].mxu0  ;;  %v1026_v2 = vsel %vm258_vm2, %v1022_v60, -inf }
 0x94f   :  { %1027 = vmax.xlane.f32.xlu1 %v1026_v2 }
 0x960   :  { %1047 = vrot.lane.b32.xlu1 %v2337_v11, %s2109_s16 }
 0x964   :  { %1741 = vrot.lane.b32.xlu1 %v1740_v53, %s2092_s28 }
 0x968   :  { %1746 = vrot.lane.b32.xlu1 %v1745_v45, %s2110_s19 }
 0x9d8   :  { %v1025_v5 = vpop.xlane.xlu0 %1024 }
 0x9d9   :  { %v1029_v6 = vsub.f32 %v1021_v51, %v1025_v5 }
 0x9db   :  { %v1031_v7 = vmul.f32 1.442695, %v1029_v6 }
 0x9dc   :  { %v1028_v8 = vpop.xlane.xlu1 %1027 }
 0x9dd   :  { %1789 = vpow2.f32 %v1031_v7  ;;  %v1030_v9 = vsub.f32 %v1022_v60, %v1028_v8 }
 0x9df   :  { %v1033_v10 = vmul.f32 1.442695, %v1030_v9 }
 0x9e0   :  { %v1048_v12 = vpop.permute.xlu1 %1047 }
 0x9e1   :  { %1791 = vpow2.f32 %v1033_v10  ;;  %v1053_v13 = vsel %vm385_vm3, %v1048_v12, 0 }
 0x9e2   :  { %1671 = vmatpush3.bf16.msra.mxu1 %v1053_v13 }
 0x9e3   :  { %1682 = vmatprep.subr.bf16.mxu1 %v2098_v0 }
 0x9e4   :  { %v1742_v35 = vpop.permute.xlu1 %1741 }
 0x9e5   :  { %v1744_v37 = vunpack.i.h.bf16 %v1742_v35  ;;  %v1743_v38 = vunpack.i.l.bf16 %v1742_v35 }
 0x9e7   :  { %v1790_v11 = vpop.eup %1789  ;;  %v1168_v42 = vsel %vm258_vm2, %v2389_v63, %v1744_v37  ;;  %v1167_v43 = vsel %vm258_vm2, %v2387_v59, %v1743_v38 }
 0x9e8   :  { %v1035_v48 = vsel %vm258_vm2, %v1790_v11, 0.0  ;;  %v1747_v36 = vpop.permute.xlu1 %1746 }
 0x9e9   :  { %1036 = vadd.xlane.f32.xlu0 %v1035_v48  ;;  %v1749_v39 = vunpack.i.h.bf16 %v1747_v36  ;;  %v1748_v40 = vunpack.i.l.bf16 %v1747_v36  ;;  %v1761_v48 = vld [vmem:[#allocation17] sm:$0xff]  }
 0x9eb   :  { %v1792_v52 = vpop.eup %1791  ;;  %v1170_v46 = vsel %vm1169_vm4, %v1167_v43, %v1748_v40  ;;  %v1171_v47 = vsel %vm1169_vm4, %v1168_v42, %v1749_v39  ;;  %v1526_v42 = vld [vmem:[#allocation19] ss:$0 sm:$0xff] }
 0x9ec   :  { %v1038_v53 = vsel %vm258_vm2, %v1792_v52, 0.0 }
 0x9ed   :  { %1039 = vadd.xlane.f32.xlu0 %v1038_v53 }
 0xa03   :  { %1095 = vrot.lane.b32.xlu0 %v2340_v14, %s2109_s16 }
 0xa76   :  { %v1037_v15 = vpop.xlane.xlu0 %1036 }
 0xa77   :  { %1793 = vrcp.f32 %v1037_v15 }
 0xa7a   :  { %v1040_v16 = vpop.xlane.xlu0 %1039 }
 0xa7b   :  { %1795 = vrcp.f32 %v1040_v16 }
 0xa7e   :  { %v1096_v17 = vpop.permute.xlu0 %1095 }
 0xa7f   :  { %v1101_v18 = vsel %vm385_vm3, %v1096_v17, 0 }
 0xa80   :  { %1677 = vmatpush3.bf16.msra.mxu0 %v1101_v18 }
 0xa81   :  { %v1794_v19 = vpop.eup %1793  ;;  %1690 = vmatprep.subr.bf16.mxu0 %v2098_v0 }
 0xa82   :  { %v1043_v20 = vmul.f32 %v1794_v19, %v1790_v11  ;;  %v1759_v11 = vld [vmem:[#allocation14] sm:$0xff]  }
 0xa84   :  { %v1045_v21 = vpack.c.bf16 %v1043_v20, %v1043_v20 }
 0xa85   :  { %v1796_v22 = vpop.eup %1795 }
 0xa86   :  { %v1044_v23 = vmul.f32 %v1796_v22, %v1792_v52  ;;  %1673 = vmatmul.mubr.msk.bf16.vlgmr.msra.gmra.mrb[28].mxu1 %vm258_vm2, %v1045_v21  ;;  %v1762_v52 = vld [vmem:[#allocation17 + $0x8] sm:$0xff]  }
 0xa87   :  { %1686 = vmatprep.mubr.msk.bf16.mxu1 %vm2099_vm0, %v2098_v0  ;;  %1683 = vmatpush3.bf16.msra.mxu1 %v1757_v24  ;;  %v2495_v21 = vld [vmem:[#allocation11] ss:$0 sm:$0xff] }
 0xa88   :  { %v1046_v14 = vpack.c.bf16 %v1044_v23, %v1044_v23  ;;  %1684 = vmatprep.subr.bf16.mxu1 %v2098_v0 }
 0xa8a   :  { %1679 = vmatmul.mubr.msk.bf16.vlgmr.msra.gmra.mrb[32].mxu0 %vm258_vm2, %v1046_v14 }
 0xa8b   :  { %1694 = vmatprep.mubr.msk.bf16.mxu0 %vm2099_vm0, %v2098_v0  ;;  %1685 = vmatpush3.bf16.msra.mxu1 %v1758_v25  ;;  %v2498_v25 = vld [vmem:[#allocation13] ss:$0 sm:$0xff] }
 0xa8c   :  { %1698 = vmatprep.subr.bf16.mxu1 %v2098_v0  ;;  %1691 = vmatpush3.bf16.msra.mxu0 %v1759_v11 }
 0xa8d   :  { %1692 = vmatprep.subr.bf16.mxu0 %v2098_v0 }
 0xb59   :  { %v1089_v26 = vpop.f32.mrb[28].mxu1 }
 0xb5a   :  { %v1674_v27 = vpop.f32.mrb[29].mxu1 }
 0xb5b   :  { %v1092_v28 = vpop.f32.mrb[30].mxu1 }
 0xb5c   :  { %v1675_v29 = vpop.f32.mrb[31].mxu1 }
 0xb5d   :  { %v1137_v30 = vpop.f32.mrb[32].mxu0 }
 0xb5e   :  { %v1750_v31 = vpack.i.bf16 %v1137_v30, %v1089_v26  ;;  %v1680_v32 = vpop.f32.mrb[33].mxu0  ;;  %v1763_v30 = vld [vmem:[#allocation17 + $0x10] sm:$0xff]  }
 0xb5f   :  { %v1140_v33 = vpop.f32.mrb[34].mxu0  ;;  %v1522_v32 = vld [vmem:[#allocation16] ss:$0 sm:$0xff] }
 0xb60   :  { %1751 = vrot.lane.b32.xlu0 %v1750_v31, %s2111_s2  ;;  %v1681_v34 = vpop.f32.mrb[35].mxu0  ;;  %v1764_v31 = vld [vmem:[#allocation17 + $0x18] sm:$0xff]  }
 0xbd2   :  { %v1752_v41 = vpop.permute.xlu0 %1751 }
 0xbd3   :  { %v1754_v44 = vunpack.i.h.bf16 %v1752_v41  ;;  %v1753_v45 = vunpack.i.l.bf16 %v1752_v41 }
 0xbd5   :  { %v1174_v49 = vsel %vm1172_vm5, %v1171_v47, %v1754_v44  ;;  %v1173_v50 = vsel %vm1172_vm5, %v1170_v46, %v1753_v45 }
 0xbd6   :  { %v1175_v51 = vpack.c.bf16 %v1174_v49, %v1173_v50 }
 0xbd8   :  { %1687 = vmatmul.mubr.msk.bf16.vlgmr.msra.gmra.mrb[32].mxu1 %vm208_vm1, %v1175_v51 }
 0xbd9   :  { %1706 = vmatprep.mubr.msk.bf16.mxu1 %vm2099_vm0, %v2098_v0  ;;  %1699 = vmatpush3.bf16.msra.mxu1 %v1761_v48 }
 0xbda   :  { %1700 = vmatprep.subr.bf16.mxu1 %v2098_v0 }
 0xbdd   :  { %1701 = vmatpush3.bf16.msra.mxu1 %v1762_v52 }
 0xbde   :  { %1702 = vmatprep.subr.bf16.mxu1 %v2098_v0 }
 0xbe1   :  { %1703 = vmatpush3.bf16.msra.mxu1 %v1763_v30 }
 0xbe2   :  { %1704 = vmatprep.subr.bf16.mxu1 %v2098_v0 }
 0xbe5   :  { %1705 = vmatpush3.bf16.msra.mxu1 %v1764_v31 }
 0xcab   :  { %v1235_v55 = vpop.f32.mrb[32].mxu1 }
 0xcac   :  { %v1236_v56 = vadd.f32 %v1516_v54, %v1235_v55  ;;  %v1688_v57 = vpop.f32.mrb[33].mxu1 }
 0xcad   :  { %v1238_v63 = vpop.f32.mrb[34].mxu1 }
 0xcae   :  { %v1239_v58 = vadd.f32 %v1516_v54, %v1238_v63  ;;  %v1689_v60 = vpop.f32.mrb[35].mxu1  ;;  %v1242_v59 = vadd.f32 %v1236_v56, %v2326_v3 }
 0xcb0   :  { %v1244_v61 = vsel %vm208_vm1, %v1242_v59, 0.0  ;;  %v1243_v62 = vadd.f32 %v1239_v58, %v2328_v4  ;;  %v1760_v4 = vld [vmem:[#allocation14 + $0x8] sm:$0xff]  }
 0xcb1   :  { %1245 = vadd.xlane.f32.xlu1 %v1244_v61  ;;  %1693 = vmatpush3.bf16.msra.mxu0 %v1760_v4 }
 0xcb2   :  { %v1247_v1 = vsel %vm208_vm1, %v1243_v62, 0.0 }
 0xcb3   :  { %1248 = vadd.xlane.f32.xlu0 %v1247_v1 }
 0xd3e   :  { %v1246_v2 = vpop.xlane.xlu1 %1245 }
 0xd3f   :  { %v1251_v5 = vmul.f32 0.03125, %v1246_v2 }
 0xd40   :  { %v1249_v6 = vpop.xlane.xlu0 %1248 }
 0xd41   :  { %v1253_v7 = vsub.f32 %v1242_v59, %v1251_v5  ;;  %v1252_v8 = vmul.f32 0.03125, %v1249_v6 }
 0xd43   :  { %v1254_v9 = vsub.f32 %v1243_v62, %v1252_v8  ;;  %v1255_v10 = vmul.f32 %v1253_v7, %v1253_v7 }
 0xd45   :  { %v1257_v12 = vsel %vm208_vm1, %v1255_v10, 0.0  ;;  %v1256_v13 = vmul.f32 %v1254_v9, %v1254_v9 }
 0xd46   :  { %1258 = vadd.xlane.f32.xlu0 %v1257_v12 }
 0xd47   :  { %v1260_v3 = vsel %vm208_vm1, %v1256_v13, 0.0 }
 0xd48   :  { %1261 = vadd.xlane.f32.xlu1 %v1260_v3 }
 0xdd3   :  { %v1259_v53 = vpop.xlane.xlu0 %1258 }
 0xdd4   :  { %v1263_v15 = vmul.f32 0.03125, %v1259_v53 }
 0xdd5   :  { %v1262_v16 = vpop.xlane.xlu1 %1261 }
 0xdd6   :  { %v1265_v17 = vadd.f32 1e-05, %v1263_v15  ;;  %v1264_v18 = vmul.f32 0.03125, %v1262_v16 }
 0xdd8   :  { %1797 = vrsqrt.f32 %v1265_v17  ;;  %v1266_v19 = vadd.f32 1e-05, %v1264_v18 }
 0xdda   :  { %1799 = vrsqrt.f32 %v1266_v19 }
 0xde2   :  { %v1798_v20 = vpop.eup %1797 }
 0xde3   :  { %v1269_v22 = vmul.f32 %v1798_v20, %v1253_v7 }
 0xde4   :  { %v1800_v23 = vpop.eup %1799 }
 0xde5   :  { %v1277_v14 = vmul.f32 %v2495_v21, %v1269_v22  ;;  %v1270_v24 = vmul.f32 %v1800_v23, %v1254_v9 }
 0xde7   :  { %v1278_v26 = vmul.f32 %v2495_v21, %v1270_v24  ;;  %v1285_v27 = vadd.f32 %v2498_v25, %v1277_v14 }
 0xde9   :  { %v1286_v28 = vadd.f32 %v2498_v25, %v1278_v26 }
 0xdeb   :  { %v1287_v29 = vpack.c.bf16 %v1286_v28, %v1285_v27 }
 0xded   :  { %1695 = vmatmul.mubr.msk.bf16.vlgmr.msra.gmra.mrb[36].mxu0 %vm208_vm1, %v1287_v29 }
 0xec0   :  { %v1347_v33 = vpop.f32.mrb[36].mxu0 }
 0xec1   :  { %v1348_v34 = vadd.f32 %v1522_v32, %v1347_v33  ;;  %v1696_v35 = vpop.f32.mrb[37].mxu0 }
 0xec2   :  { %v1350_v36 = vpop.f32.mrb[38].mxu0 }
 0xec3   :  { %v1351_v37 = vadd.f32 %v1522_v32, %v1350_v36  ;;  %v1697_v38 = vpop.f32.mrb[39].mxu0  ;;  %v1354_v39 = vmax.f32 %v1348_v34, 0.0 }
 0xec5   :  { %v1355_v40 = vmax.f32 %v1351_v37, 0.0 }
 0xec7   :  { %v1356_v41 = vpack.c.bf16 %v1355_v40, %v1354_v39 }
 0xec9   :  { %1707 = vmatmul.mubr.msk.bf16.vlgmr.msra.gmra.mrb[36].mxu1 %vm1395_vm6, %v1356_v41 }
 0xf9c   :  { %v1433_v43 = vpop.f32.mrb[36].mxu1 }
 0xf9d   :  { %v1434_v44 = vadd.f32 %v1526_v42, %v1433_v43  ;;  %v1708_v45 = vpop.f32.mrb[37].mxu1 }
 0xf9e   :  { %v1436_v46 = vpop.f32.mrb[38].mxu1 }
 0xf9f   :  { %v1437_v0 = vadd.f32 %v1526_v42, %v1436_v46  ;;  %v1709_v47 = vpop.f32.mrb[39].mxu1  ;;  %v1440_v49 = vadd.f32 %v1434_v44, %v1285_v27 }
 0xfa1   :  { %v1442_v50 = vsel %vm208_vm1, %v1440_v49, 0.0  ;;  %v1441_v51 = vadd.f32 %v1437_v0, %v1286_v28 }
 0xfa2   :  { %1443 = vadd.xlane.f32.xlu0 %v1442_v50 }
 0xfa3   :  { %v1445_v54 = vsel %vm208_vm1, %v1441_v51, 0.0 }
 0xfa4   :  { %1446 = vadd.xlane.f32.xlu1 %v1445_v54 }
0x102f   :  { %v1444_v55 = vpop.xlane.xlu0 %1443 }
0x1030   :  { %v1448_v56 = vmul.f32 0.03125, %v1444_v55 }
0x1031   :  { %v1447_v57 = vpop.xlane.xlu1 %1446 }
0x1032   :  { %v1450_v63 = vsub.f32 %v1440_v49, %v1448_v56  ;;  %v1449_v58 = vmul.f32 0.03125, %v1447_v57 }
0x1034   :  { %v1451_v60 = vsub.f32 %v1441_v51, %v1449_v58  ;;  %v1452_v59 = vmul.f32 %v1450_v63, %v1450_v63 }
0x1036   :  { %v1454_v61 = vsel %vm208_vm1, %v1452_v59, 0.0  ;;  %v1453_v62 = vmul.f32 %v1451_v60, %v1451_v60 }
0x1037   :  { %1455 = vadd.xlane.f32.xlu0 %v1454_v61 }
0x1038   :  { %v1457_v1 = vsel %vm208_vm1, %v1453_v62, 0.0 }
0x1039   :  { %1458 = vadd.xlane.f32.xlu1 %v1457_v1 }
0x10c4   :  { %v1456_v2 = vpop.xlane.xlu0 %1455 }
0x10c5   :  { %v1460_v5 = vmul.f32 0.03125, %v1456_v2 }
0x10c6   :  { %v1459_v6 = vpop.xlane.xlu1 %1458 }
0x10c7   :  { %v1462_v7 = vadd.f32 1e-05, %v1460_v5  ;;  %v1461_v8 = vmul.f32 0.03125, %v1459_v6 }
0x10c9   :  { %1801 = vrsqrt.f32 %v1462_v7  ;;  %v1463_v9 = vadd.f32 1e-05, %v1461_v8 }
0x10cb   :  { %1803 = vrsqrt.f32 %v1463_v9 }
0x10d3   :  { %v1802_v10 = vpop.eup %1801 }
0x10d4   :  { %v1466_v12 = vmul.f32 %v1802_v10, %v1450_v63 }
0x10d5   :  { %v1804_v13 = vpop.eup %1803 }
0x10d6   :  { %v1467_v3 = vmul.f32 %v1804_v13, %v1451_v60  ;;  %v1468_v11 = vmul.f32 %v2495_v21, %v1466_v12 }
0x10d8   :  { %v1469_v4 = vmul.f32 %v2495_v21, %v1467_v3  ;;  %v1470_v48 = vadd.f32 %v2498_v25, %v1468_v11 }
0x10da   :  { %v1471_v52 = vadd.f32 %v2498_v25, %v1469_v4  ;;  %1472 = vst.msk [vmem:[#allocation20] sm:$0xff] %vm208_vm1, %v1470_v48 }
0x10dc   :  { %1473 = vst.msk [vmem:[#allocation20 + $0x8] sm:$0xff] %vm208_vm1, %v1471_v52 }
0x10dd   :  { %2058 = shalt.err (!%p2055_p8)
}
0x10de   :  { %s2059_s21 = scalar_lea.hbm %s2541_s11, 256 }
0x10df   :  { %p2060_p9 = scmp.ne.s32.totalorder %s2541_s11, %s2059_s21  ;;  %p2063_p10 = scmp.lt.u32.totalorder %s2059_s21, %s2541_s11 }
0x10e1   :  { %p2065_p11 = pnand %p2063_p10, %p2060_p9 }
0x10e3   :  { %2068 = shalt.err (!%p2065_p11)
}
0x10e4   :  { %1485 = dma.vmem_to_hbm [thread:$0]  %s1480_s6, 256, %s2541_s11, [#allocation4], %s2091_s9, %s2091_s9, %s2092_s28  }
0x10e5   :  { %2081 = dma.done.wait [#allocation4], 256  }
0x10e6   :  { %2082 = vsyncadd [#allocation4], 4294967040 }
0x10e7   :  { %1489 = vsyncpa [#allocation3], 1 }
0x10e8   :  { %1490 = vsyncpa [#allocation6], 1 }
0x10e9   :  { %1491 = vsyncpa [#allocation9], 1 }
0x10ea   :  { %1492 = vsyncpa [#allocation12], 1 }
0x10eb   :  { %1493 = vsyncpa [#allocation15], 1 }
0x10ec   :  { %1494 = vsyncpa [#allocation18], 1 }
0x10ed   :  { %1495 = vsyncpa [#allocation4], 1 }

</bundles_post_ra>
